<compile_context>
chip_gen: v5e
topology: v5e:2x2
jax: 0.10.0
libtpu: 0.0.40
codegen_flags: <defaults>
</compile_context>

<pallas_src>
import functools

import jax
import jax.numpy as jnp
from jax.experimental import pallas as pl
from jax.experimental.pallas import tpu as pltpu


# -----------------------------------------------------------------------------
# Pallas kernel: fused (BN-folded) conv-matmul + PReLU + optional residual ReLU
# -----------------------------------------------------------------------------
def _fused_mm_kernel(*refs, apply_act, add_res):
    if add_res:
        w_ref, x_ref, ss_ref, res_ref, o_ref = refs
    else:
        w_ref, x_ref, ss_ref, o_ref = refs
        res_ref = None
    # w: [N, K] bf16 (BN scale pre-folded), x: [K, tm] bf16,
    # ss: [N, 2] f32 (col 0 = shift, col 1 = PReLU alpha), res/o: [N, tm] f32.
    y = jnp.dot(w_ref[...], x_ref[...], preferred_element_type=jnp.float32)
    y = y + ss_ref[:, 0:1]
    if apply_act:                        # PReLU (alpha=0 -> ReLU)
        y = jnp.where(y > 0, y, ss_ref[:, 1:2] * y)
    if add_res:                          # fused residual: relu(main + other)
        y = jnp.maximum(y + res_ref[...], 0.0)
    o_ref[...] = y.astype(o_ref.dtype)


def _choose_tm(m):
    if m >= 1024:
        return 512
    if m >= 256:                         # keep >= 2 grid steps (v7x has 2 TCs)
        return ((m // 2 + 127) // 128) * 128
    return ((m + 127) // 128) * 128


def fused_matmul_cm(wmat, xmat, shift, alpha, *, apply_act, residual=None):
    """[N,K] @ [K,M] -> [N,M] with fused shift/PReLU and optional relu(y+res)."""
    N, K = wmat.shape
    M = xmat.shape[1]
    tm = _choose_tm(M)
    m_pad = pl.cdiv(M, tm) * tm
    if m_pad != M:
        xmat = jnp.pad(xmat, ((0, 0), (0, m_pad - M)))
        if residual is not None:
            residual = jnp.pad(residual, ((0, 0), (0, m_pad - M)))
    ss = jnp.stack([shift, alpha], axis=1).astype(jnp.float32)     # [N, 2]

    in_specs = [
        pl.BlockSpec((N, K), lambda i: (0, 0)),
        pl.BlockSpec((K, tm), lambda i: (0, i)),
        pl.BlockSpec((N, 2), lambda i: (0, 0)),
    ]
    args = [wmat.astype(jnp.bfloat16), xmat.astype(jnp.bfloat16), ss]
    if residual is not None:
        in_specs.append(pl.BlockSpec((N, tm), lambda i: (0, i)))
        args.append(residual.astype(jnp.float32))

    out = pl.pallas_call(
        functools.partial(_fused_mm_kernel, apply_act=apply_act,
                          add_res=residual is not None),
        out_shape=jax.ShapeDtypeStruct((N, m_pad), jnp.float32),
        grid=(m_pad // tm,),
        in_specs=in_specs,
        out_specs=pl.BlockSpec((N, tm), lambda i: (0, i)),
        compiler_params=pltpu.CompilerParams(dimension_semantics=("parallel",)),
    )(*args)
    if m_pad != M:
        out = out[:, :M]
    return out


# -----------------------------------------------------------------------------
# Conv plumbing (glue): im2col in [C, B, H, W] layout + fused Pallas matmul
# -----------------------------------------------------------------------------
# TODO(synk): spatial-shift im2col is plain-JAX glue; moving the kh*kw shifts
# into the kernel (halo-aware tiling) would remove the extra HBM round trips.
def im2col_cm(x, kh, kw, stride, padding, dilation):
    C, B, H, W = x.shape
    sh, sw = stride
    ph, pw = padding
    dh, dw = dilation
    xp = jnp.pad(x, ((0, 0), (0, 0), (ph, ph), (pw, pw)))
    Hp, Wp = H + 2 * ph, W + 2 * pw
    Ho = (Hp - dh * (kh - 1) - 1) // sh + 1
    Wo = (Wp - dw * (kw - 1) - 1) // sw + 1
    cols = []
    for i in range(kh):
        for j in range(kw):
            cols.append(xp[:, :,
                           i * dh: i * dh + sh * (Ho - 1) + 1: sh,
                           j * dw: j * dw + sw * (Wo - 1) + 1: sw])
    pat = jnp.stack(cols, axis=1)                     # [C, kh*kw, B, Ho, Wo]
    pat = pat.reshape(C * kh * kw, B * Ho * Wo)       # K order = (c, i, j)
    return pat, Ho, Wo


def conv_block_cm(x, w, b=None, bn=None, alpha=None, stride=(1, 1),
                  padding=(0, 0), dilation=(1, 1), act='none', residual=None):
    """Conv2d (+bias) + folded BatchNorm + PReLU (+ fused relu(y+residual)).

    x: [C_in, B, H, W]; w: [N_out, C_in, kh, kw]; residual: [N_out, B, Ho, Wo].
    Returns [N_out, B, Ho, Wo].
    """
    N_out, C_in, kh, kw = w.shape
    C, B, H, W = x.shape
    if kh == 1 and kw == 1 and stride == (1, 1) and padding == (0, 0):
        pat, Ho, Wo = x.reshape(C, B * H * W), H, W            # 1x1: no im2col
    else:
        pat, Ho, Wo = im2col_cm(x, kh, kw, stride, padding, dilation)

    wmat = w.reshape(N_out, C_in * kh * kw)
    if bn is not None:
        s = bn['gamma'] / jnp.sqrt(bn['var'] + bn['eps'])
        wmat = wmat * s[:, None]                               # fold BN scale
        shift = bn['beta'] - bn['mean'] * s
        if b is not None:
            shift = shift + b * s
    else:
        shift = b if b is not None else jnp.zeros((N_out,), jnp.float32)

    if act == 'prelu':
        a, apply = alpha, True
    elif act == 'relu':
        a, apply = jnp.zeros((N_out,), jnp.float32), True
    else:
        a, apply = jnp.zeros((N_out,), jnp.float32), False

    res = None if residual is None else residual.reshape(N_out, B * Ho * Wo)
    y = fused_matmul_cm(wmat, pat, shift, a, apply_act=apply, residual=res)
    return y.reshape(N_out, B, Ho, Wo)


def max_pool_2x2_cm(x, return_indices=False):
    # TODO(synk): max-pool (+ index extraction) is plain-JAX glue, not a Pallas kernel.
    C, B, H, W = x.shape
    xr = x.reshape(C, B, H // 2, 2, W // 2, 2)
    vals = xr.max(axis=(3, 5))
    if not return_indices:
        return vals
    windows = xr.transpose(0, 1, 2, 4, 3, 5).reshape(C, B, H // 2, W // 2, 4)
    arg = jnp.argmax(windows, axis=-1)
    dh, dw = arg // 2, arg % 2
    base_h = (jnp.arange(H // 2) * 2)[:, None]
    base_w = (jnp.arange(W // 2) * 2)[None, :]
    idx = (base_h + dh) * W + (base_w + dw)
    return vals, idx.transpose(1, 0, 2, 3).astype(jnp.int32)   # -> [B, C, H/2, W/2]


# -----------------------------------------------------------------------------
# Parameter construction (deterministic, in-script)
# -----------------------------------------------------------------------------
def make_bn(c):
    return {'gamma': jnp.ones((c,), jnp.float32),
            'beta': jnp.zeros((c,), jnp.float32),
            'mean': jnp.zeros((c,), jnp.float32),
            'var': jnp.ones((c,), jnp.float32),
            'eps': 1e-3}


def init_conv(key, out_c, in_c, kh, kw, bias=True):
    kw_, kb = jax.random.split(key)
    fan_in = in_c * kh * kw
    w = jax.random.normal(kw_, (out_c, in_c, kh, kw), jnp.float32) / jnp.sqrt(fan_in)
    b = jax.random.normal(kb, (out_c,), jnp.float32) * 0.01 if bias else None
    return w, b


def make_bottleneck_params(key, in_c, out_c, kind='reg', dilation=1):
    internal = out_c // 4
    keys = jax.random.split(key, 4)
    s = 2 if kind == 'down' else 1
    p = {'kind': kind, 'in_c': in_c, 'out_c': out_c, 'dil': dilation}
    p['w1'], _ = init_conv(keys[0], internal, in_c, s, s, bias=False)
    p['bn1'] = make_bn(internal)
    p['a1'] = 0.25 * jnp.ones((internal,), jnp.float32)
    if kind == 'sep':
        p['wm1'], _ = init_conv(keys[1], internal, internal, 5, 1, bias=False)
        p['wm2'], p['bm'] = init_conv(keys[2], internal, internal, 1, 5, bias=True)
    else:
        p['wm'], p['bm'] = init_conv(keys[1], internal, internal, 3, 3, bias=True)
    p['bnm'] = make_bn(internal)
    p['am'] = 0.25 * jnp.ones((internal,), jnp.float32)
    p['w2'], _ = init_conv(keys[3], out_c, internal, 1, 1, bias=False)
    p['bn2'] = make_bn(out_c)
    p['a2'] = 0.25 * jnp.ones((out_c,), jnp.float32)
    return p


def build_encoder_params(key, n_classes, image_size, hidden_channels):
    keys = jax.random.split(key, 24)
    hc = hidden_channels
    layers = []
    # initial block
    w, b = init_conv(keys[0], hc[0], image_size[2], 3, 3, bias=True)
    layers.append(('initial', {'w': w, 'b': b, 'bn': make_bn(hc[0]),
                               'alpha': 0.25 * jnp.ones((hc[0],), jnp.float32)}))
    # bottleneck_1_0 (downsampling)
    layers.append(('bneck', make_bottleneck_params(keys[1], hc[1], hc[2], 'down')))
    # bottleneck_1_1 .. 1_4 : PyTorch repeats ONE module 4x (shared weights)
    shared = make_bottleneck_params(keys[2], hc[2], hc[2], 'reg')
    layers.extend([('bneck', shared)] * 4)
    # bottleneck_2_0 (downsampling)
    layers.append(('bneck', make_bottleneck_params(keys[3], hc[2], hc[3], 'down')))
    # bottleneck_2_1..2_8 and 3_1..3_8 : the 8-module list is reused twice
    specs = [('reg', 1), ('dil', 2), ('sep', 1), ('dil', 4),
             ('reg', 1), ('dil', 8), ('sep', 1), ('dil', 16)]
    stage = [('bneck', make_bottleneck_params(keys[4 + i], hc[3], hc[3], k, d))
             for i, (k, d) in enumerate(specs)]
    layers.extend(stage)
    layers.extend(stage)
    # classifier (only_encode=True)
    wc, bc = init_conv(keys[20], n_classes, hc[3], 1, 1, bias=True)
    layers.append(('classifier', {'w': wc, 'b': bc}))
    return layers


# -----------------------------------------------------------------------------
# Forward pass (activations kept in [C, B, H, W] layout throughout)
# -----------------------------------------------------------------------------
def initial_block_forward(x, p):
    conv = conv_block_cm(x, p['w'], p['b'], bn=p['bn'], alpha=p['alpha'],
                         stride=(2, 2), padding=(1, 1), act='prelu')
    pooled = max_pool_2x2_cm(x)
    return jnp.concatenate([conv, pooled], axis=0)


def bottleneck_forward(x, p):
    kind = p['kind']
    if kind == 'down':
        main, idx = max_pool_2x2_cm(x, return_indices=True)
        pad_c = p['out_c'] - p['in_c']
        if pad_c > 0:
            _, B, H2, W2 = main.shape
            main = jnp.concatenate(
                [main, jnp.zeros((pad_c, B, H2, W2), main.dtype)], axis=0)
    else:
        main, idx = x, None

    s = (2, 2) if kind == 'down' else (1, 1)
    h = conv_block_cm(x, p['w1'], None, bn=p['bn1'], alpha=p['a1'],
                      stride=s, act='prelu')
    if kind == 'sep':
        h = conv_block_cm(h, p['wm1'], None, bn=None, padding=(2, 0), act='none')
        h = conv_block_cm(h, p['wm2'], p['bm'], bn=p['bnm'], alpha=p['am'],
                          padding=(0, 2), act='prelu')
    elif kind == 'dil':
        d = p['dil']
        h = conv_block_cm(h, p['wm'], p['bm'], bn=p['bnm'], alpha=p['am'],
                          padding=(d, d), dilation=(d, d), act='prelu')
    else:  # 'reg' or 'down'
        h = conv_block_cm(h, p['wm'], p['bm'], bn=p['bnm'], alpha=p['am'],
                          padding=(1, 1), act='prelu')
    # NOTE: nn.Dropout2d exists in __init__ but is never applied in forward().
    # Final 1x1 conv with fused residual: y = relu(main + prelu(bn(conv(h))))
    y = conv_block_cm(h, p['w2'], None, bn=p['bn2'], alpha=p['a2'], act='prelu',
                      residual=main)
    if kind == 'down':
        return y, idx
    return y


def encoder_forward(x_nchw, layers, image_size):
    y = x_nchw.transpose(1, 0, 2, 3)          # NCHW -> [C, B, H, W]
    pooling_stack = []
    for kind, p in layers:
        if kind == 'initial':
            y = initial_block_forward(y, p)
        elif kind == 'bneck':
            if p['kind'] == 'down':
                y, idx = bottleneck_forward(y, p)
                pooling_stack.append(idx)
            else:
                y = bottleneck_forward(y, p)
        else:  # classifier 1x1 conv, no BN/activation
            y = conv_block_cm(y, p['w'], p['b'])
    y = y.transpose(1, 0, 2, 3)                # back to NCHW
    # TODO(synk): fct.upsample bilinear is plain-JAX glue (align_corners=False semantics).
    B, C = y.shape[0], y.shape[1]
    y = jax.image.resize(y, (B, C, image_size[0], image_size[1]),
                         method='bilinear')
    return y, pooling_stack


# -----------------------------------------------------------------------------
if __name__ == "__main__":
    key = jax.random.PRNGKey(0)
    k_param, k_x = jax.random.split(key)

    n_classes = 4
    image_size = (64, 64, 3)            # (H, W, C) as in the PyTorch module
    hidden_channels = [13, 16, 32, 64]  # hc[1] = hc[0] + in_channels (ENet style)
    batch = 2

    layers = build_encoder_params(k_param, n_classes, image_size, hidden_channels)
    x = jax.random.normal(k_x, (batch, image_size[2], image_size[0], image_size[1]),
                          jnp.float32)

    fwd = jax.jit(lambda inp: encoder_forward(inp, layers, image_size))
    y, pooling_stack = fwd(x)
    jax.block_until_ready(y)
    for idx in pooling_stack:
        jax.block_until_ready(idx)

    assert y.shape == (batch, n_classes, image_size[0], image_size[1])
    assert len(pooling_stack) == 2
    print("KERNEL_OK")
</pallas_src>

<mosaic_0001>
module attributes {stable_mosaic.version = 11 : i64} {
  func.func @_fused_mm_kernel(%arg0: i32, %arg1: memref<13x27xbf16, #tpu.memory_space<vmem>>, %arg2: memref<27x512xbf16, #tpu.memory_space<vmem>>, %arg3: memref<13x2xf32, #tpu.memory_space<vmem>>, %arg4: memref<13x512xf32, #tpu.memory_space<vmem>>) attributes {dimension_semantics = [#tpu.dimension_semantics<parallel>], iteration_bounds = array<i64: 4>, scalar_prefetch = 0 : i64, scratch_operands = 0 : i64, tpu.core_type = #tpu.core_type<tc>, window_params = [{pipeline_mode = #tpu.pipeline_mode<synchronous>, transform_indices = @transform_0, window_bounds = array<i64: 13, 27>}, {transform_indices = @transform_1, window_bounds = array<i64: 27, 512>}, {pipeline_mode = #tpu.pipeline_mode<synchronous>, transform_indices = @transform_2, window_bounds = array<i64: 13, 2>}, {transform_indices = @transform_3, window_bounds = array<i64: 13, 512>}]} {
    %c0 = arith.constant 0 : index
    %c0_0 = arith.constant 0 : index
    %0 = vector.load %arg1[%c0, %c0_0] : memref<13x27xbf16, #tpu.memory_space<vmem>>, vector<13x27xbf16>
    %c0_1 = arith.constant 0 : index
    %c0_2 = arith.constant 0 : index
    %1 = vector.load %arg2[%c0_1, %c0_2] : memref<27x512xbf16, #tpu.memory_space<vmem>>, vector<27x512xbf16>
    %cst = arith.constant dense<0.000000e+00> : vector<13x512xf32>
    %2 = tpu.matmul %0, %1, %cst {dimension_numbers = #tpu.dot_dimension_numbers<[1], [0], [0], [1], [0, 0, 1, 1], [], []>} : vector<13x27xbf16>, vector<27x512xbf16>, vector<13x512xf32> -> vector<13x512xf32>
    %c0_3 = arith.constant 0 : index
    %c0_4 = arith.constant 0 : index
    %3 = vector.load %arg3[%c0_3, %c0_4] : memref<13x2xf32, #tpu.memory_space<vmem>>, vector<13x1xf32>
    %4 = vector.broadcast %3 : vector<13x1xf32> to vector<13x512xf32>
    %5 = arith.addf %2, %4 : vector<13x512xf32>
    %cst_5 = arith.constant 0.000000e+00 : f32
    %6 = vector.broadcast %cst_5 : f32 to vector<13x512xf32>
    %7 = arith.cmpf ogt, %5, %6 : vector<13x512xf32>
    %c0_6 = arith.constant 0 : index
    %c1 = arith.constant 1 : index
    %8 = vector.load %arg3[%c0_6, %c1] : memref<13x2xf32, #tpu.memory_space<vmem>>, vector<13x1xf32>
    %9 = vector.broadcast %8 : vector<13x1xf32> to vector<13x512xf32>
    %10 = arith.mulf %9, %5 : vector<13x512xf32>
    %11 = arith.select %7, %5, %10 : vector<13x512xi1>, vector<13x512xf32>
    %c0_7 = arith.constant 0 : index
    %c0_8 = arith.constant 0 : index
    %12 = vector.load %arg4[%c0_7, %c0_8] : memref<13x512xf32, #tpu.memory_space<vmem>>, vector<13x512xf32>
    tpu.vector_store %arg4[%c0_7, %c0_8], %11 {strides = array<i32>} : memref<13x512xf32, #tpu.memory_space<vmem>>, vector<13x512xf32>,
    return
  }
  func.func @transform_0(%arg0: i32) -> (i32, i32) {
    %c0_i32 = arith.constant 0 : i32
    %c0_i32_0 = arith.constant 0 : i32
    %c0_i32_1 = arith.constant 0 : i32
    return %c0_i32, %c0_i32_0 : i32, i32
  }
  func.func @transform_1(%arg0: i32) -> (i32, i32) {
    %c0_i32 = arith.constant 0 : i32
    %c0_i32_0 = arith.constant 0 : i32
    return %c0_i32, %arg0 : i32, i32
  }
  func.func @transform_2(%arg0: i32) -> (i32, i32) {
    %c0_i32 = arith.constant 0 : i32
    %c0_i32_0 = arith.constant 0 : i32
    %c0_i32_1 = arith.constant 0 : i32
    return %c0_i32, %c0_i32_0 : i32, i32
  }
  func.func @transform_3(%arg0: i32) -> (i32, i32) {
    %c0_i32 = arith.constant 0 : i32
    %c0_i32_0 = arith.constant 0 : i32
    return %c0_i32, %arg0 : i32, i32
  }
}

module attributes {stable_mosaic.version = 11 : i64} {
  func.func @_fused_mm_kernel(%arg0: i32, %arg1: memref<8x64xbf16, #tpu.memory_space<vmem>>, %arg2: memref<64x256xbf16, #tpu.memory_space<vmem>>, %arg3: memref<8x2xf32, #tpu.memory_space<vmem>>, %arg4: memref<8x256xf32, #tpu.memory_space<vmem>>) attributes {dimension_semantics = [#tpu.dimension_semantics<parallel>], iteration_bounds = array<i64: 2>, scalar_prefetch = 0 : i64, scratch_operands = 0 : i64, tpu.core_type = #tpu.core_type<tc>, window_params = [{pipeline_mode = #tpu.pipeline_mode<synchronous>, transform_indices = @transform_0, window_bounds = array<i64: 8, 64>}, {transform_indices = @transform_1, window_bounds = array<i64: 64, 256>}, {pipeline_mode = #tpu.pipeline_mode<synchronous>, transform_indices = @transform_2, window_bounds = array<i64: 8, 2>}, {transform_indices = @transform_3, window_bounds = array<i64: 8, 256>}]} {
    %c0 = arith.constant 0 : index
    %c0_0 = arith.constant 0 : index
    %0 = vector.load %arg1[%c0, %c0_0] : memref<8x64xbf16, #tpu.memory_space<vmem>>, vector<8x64xbf16>
    %c0_1 = arith.constant 0 : index
    %c0_2 = arith.constant 0 : index
    %1 = vector.load %arg2[%c0_1, %c0_2] : memref<64x256xbf16, #tpu.memory_space<vmem>>, vector<64x256xbf16>
    %cst = arith.constant dense<0.000000e+00> : vector<8x256xf32>
    %2 = tpu.matmul %0, %1, %cst {dimension_numbers = #tpu.dot_dimension_numbers<[1], [0], [0], [1], [0, 0, 1, 1], [], []>} : vector<8x64xbf16>, vector<64x256xbf16>, vector<8x256xf32> -> vector<8x256xf32>
    %c0_3 = arith.constant 0 : index
    %c0_4 = arith.constant 0 : index
    %3 = vector.load %arg3[%c0_3, %c0_4] : memref<8x2xf32, #tpu.memory_space<vmem>>, vector<8x1xf32>
    %4 = vector.broadcast %3 : vector<8x1xf32> to vector<8x256xf32>
    %5 = arith.addf %2, %4 : vector<8x256xf32>
    %cst_5 = arith.constant 0.000000e+00 : f32
    %6 = vector.broadcast %cst_5 : f32 to vector<8x256xf32>
    %7 = arith.cmpf ogt, %5, %6 : vector<8x256xf32>
    %c0_6 = arith.constant 0 : index
    %c1 = arith.constant 1 : index
    %8 = vector.load %arg3[%c0_6, %c1] : memref<8x2xf32, #tpu.memory_space<vmem>>, vector<8x1xf32>
    %9 = vector.broadcast %8 : vector<8x1xf32> to vector<8x256xf32>
    %10 = arith.mulf %9, %5 : vector<8x256xf32>
    %11 = arith.select %7, %5, %10 : vector<8x256xi1>, vector<8x256xf32>
    %c0_7 = arith.constant 0 : index
    %c0_8 = arith.constant 0 : index
    %12 = vector.load %arg4[%c0_7, %c0_8] : memref<8x256xf32, #tpu.memory_space<vmem>>, vector<8x256xf32>
    tpu.vector_store %arg4[%c0_7, %c0_8], %11 {strides = array<i32>} : memref<8x256xf32, #tpu.memory_space<vmem>>, vector<8x256xf32>,
    return
  }
  func.func @transform_0(%arg0: i32) -> (i32, i32) {
    %c0_i32 = arith.constant 0 : i32
    %c0_i32_0 = arith.constant 0 : i32
    %c0_i32_1 = arith.constant 0 : i32
    return %c0_i32, %c0_i32_0 : i32, i32
  }
  func.func @transform_1(%arg0: i32) -> (i32, i32) {
    %c0_i32 = arith.constant 0 : i32
    %c0_i32_0 = arith.constant 0 : i32
    return %c0_i32, %arg0 : i32, i32
  }
  func.func @transform_2(%arg0: i32) -> (i32, i32) {
    %c0_i32 = arith.constant 0 : i32
    %c0_i32_0 = arith.constant 0 : i32
    %c0_i32_1 = arith.constant 0 : i32
    return %c0_i32, %c0_i32_0 : i32, i32
  }
  func.func @transform_3(%arg0: i32) -> (i32, i32) {
    %c0_i32 = arith.constant 0 : i32
    %c0_i32_0 = arith.constant 0 : i32
    return %c0_i32, %arg0 : i32, i32
  }
}

module attributes {stable_mosaic.version = 11 : i64} {
  func.func @_fused_mm_kernel(%arg0: i32, %arg1: memref<8x72xbf16, #tpu.memory_space<vmem>>, %arg2: memref<72x256xbf16, #tpu.memory_space<vmem>>, %arg3: memref<8x2xf32, #tpu.memory_space<vmem>>, %arg4: memref<8x256xf32, #tpu.memory_space<vmem>>) attributes {dimension_semantics = [#tpu.dimension_semantics<parallel>], iteration_bounds = array<i64: 2>, scalar_prefetch = 0 : i64, scratch_operands = 0 : i64, tpu.core_type = #tpu.core_type<tc>, window_params = [{pipeline_mode = #tpu.pipeline_mode<synchronous>, transform_indices = @transform_0, window_bounds = array<i64: 8, 72>}, {transform_indices = @transform_1, window_bounds = array<i64: 72, 256>}, {pipeline_mode = #tpu.pipeline_mode<synchronous>, transform_indices = @transform_2, window_bounds = array<i64: 8, 2>}, {transform_indices = @transform_3, window_bounds = array<i64: 8, 256>}]} {
    %c0 = arith.constant 0 : index
    %c0_0 = arith.constant 0 : index
    %0 = vector.load %arg1[%c0, %c0_0] : memref<8x72xbf16, #tpu.memory_space<vmem>>, vector<8x72xbf16>
    %c0_1 = arith.constant 0 : index
    %c0_2 = arith.constant 0 : index
    %1 = vector.load %arg2[%c0_1, %c0_2] : memref<72x256xbf16, #tpu.memory_space<vmem>>, vector<72x256xbf16>
    %cst = arith.constant dense<0.000000e+00> : vector<8x256xf32>
    %2 = tpu.matmul %0, %1, %cst {dimension_numbers = #tpu.dot_dimension_numbers<[1], [0], [0], [1], [0, 0, 1, 1], [], []>} : vector<8x72xbf16>, vector<72x256xbf16>, vector<8x256xf32> -> vector<8x256xf32>
    %c0_3 = arith.constant 0 : index
    %c0_4 = arith.constant 0 : index
    %3 = vector.load %arg3[%c0_3, %c0_4] : memref<8x2xf32, #tpu.memory_space<vmem>>, vector<8x1xf32>
    %4 = vector.broadcast %3 : vector<8x1xf32> to vector<8x256xf32>
    %5 = arith.addf %2, %4 : vector<8x256xf32>
    %cst_5 = arith.constant 0.000000e+00 : f32
    %6 = vector.broadcast %cst_5 : f32 to vector<8x256xf32>
    %7 = arith.cmpf ogt, %5, %6 : vector<8x256xf32>
    %c0_6 = arith.constant 0 : index
    %c1 = arith.constant 1 : index
    %8 = vector.load %arg3[%c0_6, %c1] : memref<8x2xf32, #tpu.memory_space<vmem>>, vector<8x1xf32>
    %9 = vector.broadcast %8 : vector<8x1xf32> to vector<8x256xf32>
    %10 = arith.mulf %9, %5 : vector<8x256xf32>
    %11 = arith.select %7, %5, %10 : vector<8x256xi1>, vector<8x256xf32>
    %c0_7 = arith.constant 0 : index
    %c0_8 = arith.constant 0 : index
    %12 = vector.load %arg4[%c0_7, %c0_8] : memref<8x256xf32, #tpu.memory_space<vmem>>, vector<8x256xf32>
    tpu.vector_store %arg4[%c0_7, %c0_8], %11 {strides = array<i32>} : memref<8x256xf32, #tpu.memory_space<vmem>>, vector<8x256xf32>,
    return
  }
  func.func @transform_0(%arg0: i32) -> (i32, i32) {
    %c0_i32 = arith.constant 0 : i32
    %c0_i32_0 = arith.constant 0 : i32
    %c0_i32_1 = arith.constant 0 : i32
    return %c0_i32, %c0_i32_0 : i32, i32
  }
  func.func @transform_1(%arg0: i32) -> (i32, i32) {
    %c0_i32 = arith.constant 0 : i32
    %c0_i32_0 = arith.constant 0 : i32
    return %c0_i32, %arg0 : i32, i32
  }
  func.func @transform_2(%arg0: i32) -> (i32, i32) {
    %c0_i32 = arith.constant 0 : i32
    %c0_i32_0 = arith.constant 0 : i32
    %c0_i32_1 = arith.constant 0 : i32
    return %c0_i32, %c0_i32_0 : i32, i32
  }
  func.func @transform_3(%arg0: i32) -> (i32, i32) {
    %c0_i32 = arith.constant 0 : i32
    %c0_i32_0 = arith.constant 0 : i32
    return %c0_i32, %arg0 : i32, i32
  }
}

module attributes {stable_mosaic.version = 11 : i64} {
  func.func @_fused_mm_kernel(%arg0: i32, %arg1: memref<32x8xbf16, #tpu.memory_space<vmem>>, %arg2: memref<8x256xbf16, #tpu.memory_space<vmem>>, %arg3: memref<32x2xf32, #tpu.memory_space<vmem>>, %arg4: memref<32x256xf32, #tpu.memory_space<vmem>>, %arg5: memref<32x256xf32, #tpu.memory_space<vmem>>) attributes {dimension_semantics = [#tpu.dimension_semantics<parallel>], iteration_bounds = array<i64: 2>, scalar_prefetch = 0 : i64, scratch_operands = 0 : i64, tpu.core_type = #tpu.core_type<tc>, window_params = [{pipeline_mode = #tpu.pipeline_mode<synchronous>, transform_indices = @transform_0, window_bounds = array<i64: 32, 8>}, {transform_indices = @transform_1, window_bounds = array<i64: 8, 256>}, {pipeline_mode = #tpu.pipeline_mode<synchronous>, transform_indices = @transform_2, window_bounds = array<i64: 32, 2>}, {transform_indices = @transform_3, window_bounds = array<i64: 32, 256>}, {transform_indices = @transform_4, window_bounds = array<i64: 32, 256>}]} {
    %c0 = arith.constant 0 : index
    %c0_0 = arith.constant 0 : index
    %0 = vector.load %arg1[%c0, %c0_0] : memref<32x8xbf16, #tpu.memory_space<vmem>>, vector<32x8xbf16>
    %c0_1 = arith.constant 0 : index
    %c0_2 = arith.constant 0 : index
    %1 = vector.load %arg2[%c0_1, %c0_2] : memref<8x256xbf16, #tpu.memory_space<vmem>>, vector<8x256xbf16>
    %cst = arith.constant dense<0.000000e+00> : vector<32x256xf32>
    %2 = tpu.matmul %0, %1, %cst {dimension_numbers = #tpu.dot_dimension_numbers<[1], [0], [0], [1], [0, 0, 1, 1], [], []>} : vector<32x8xbf16>, vector<8x256xbf16>, vector<32x256xf32> -> vector<32x256xf32>
    %c0_3 = arith.constant 0 : index
    %c0_4 = arith.constant 0 : index
    %3 = vector.load %arg3[%c0_3, %c0_4] : memref<32x2xf32, #tpu.memory_space<vmem>>, vector<32x1xf32>
    %4 = vector.broadcast %3 : vector<32x1xf32> to vector<32x256xf32>
    %5 = arith.addf %2, %4 : vector<32x256xf32>
    %cst_5 = arith.constant 0.000000e+00 : f32
    %6 = vector.broadcast %cst_5 : f32 to vector<32x256xf32>
    %7 = arith.cmpf ogt, %5, %6 : vector<32x256xf32>
    %c0_6 = arith.constant 0 : index
    %c1 = arith.constant 1 : index
    %8 = vector.load %arg3[%c0_6, %c1] : memref<32x2xf32, #tpu.memory_space<vmem>>, vector<32x1xf32>
    %9 = vector.broadcast %8 : vector<32x1xf32> to vector<32x256xf32>
    %10 = arith.mulf %9, %5 : vector<32x256xf32>
    %11 = arith.select %7, %5, %10 : vector<32x256xi1>, vector<32x256xf32>
    %c0_7 = arith.constant 0 : index
    %c0_8 = arith.constant 0 : index
    %12 = vector.load %arg4[%c0_7, %c0_8] : memref<32x256xf32, #tpu.memory_space<vmem>>, vector<32x256xf32>
    %13 = arith.addf %11, %12 : vector<32x256xf32>
    %cst_9 = arith.constant 0.000000e+00 : f32
    %14 = vector.broadcast %cst_9 : f32 to vector<32x256xf32>
    %15 = arith.maximumf %13, %14 : vector<32x256xf32>
    %c0_10 = arith.constant 0 : index
    %c0_11 = arith.constant 0 : index
    %16 = vector.load %arg5[%c0_10, %c0_11] : memref<32x256xf32, #tpu.memory_space<vmem>>, vector<32x256xf32>
    tpu.vector_store %arg5[%c0_10, %c0_11], %15 {strides = array<i32>} : memref<32x256xf32, #tpu.memory_space<vmem>>, vector<32x256xf32>,
    return
  }
  func.func @transform_0(%arg0: i32) -> (i32, i32) {
    %c0_i32 = arith.constant 0 : i32
    %c0_i32_0 = arith.constant 0 : i32
    %c0_i32_1 = arith.constant 0 : i32
    return %c0_i32, %c0_i32_0 : i32, i32
  }
  func.func @transform_1(%arg0: i32) -> (i32, i32) {
    %c0_i32 = arith.constant 0 : i32
    %c0_i32_0 = arith.constant 0 : i32
    return %c0_i32, %arg0 : i32, i32
  }
  func.func @transform_2(%arg0: i32) -> (i32, i32) {
    %c0_i32 = arith.constant 0 : i32
    %c0_i32_0 = arith.constant 0 : i32
    %c0_i32_1 = arith.constant 0 : i32
    return %c0_i32, %c0_i32_0 : i32, i32
  }
  func.func @transform_3(%arg0: i32) -> (i32, i32) {
    %c0_i32 = arith.constant 0 : i32
    %c0_i32_0 = arith.constant 0 : i32
    return %c0_i32, %arg0 : i32, i32
  }
  func.func @transform_4(%arg0: i32) -> (i32, i32) {
    %c0_i32 = arith.constant 0 : i32
    %c0_i32_0 = arith.constant 0 : i32
    return %c0_i32, %arg0 : i32, i32
  }
}

module attributes {stable_mosaic.version = 11 : i64} {
  func.func @_fused_mm_kernel(%arg0: i32, %arg1: memref<8x32xbf16, #tpu.memory_space<vmem>>, %arg2: memref<32x256xbf16, #tpu.memory_space<vmem>>, %arg3: memref<8x2xf32, #tpu.memory_space<vmem>>, %arg4: memref<8x256xf32, #tpu.memory_space<vmem>>) attributes {dimension_semantics = [#tpu.dimension_semantics<parallel>], iteration_bounds = array<i64: 2>, scalar_prefetch = 0 : i64, scratch_operands = 0 : i64, tpu.core_type = #tpu.core_type<tc>, window_params = [{pipeline_mode = #tpu.pipeline_mode<synchronous>, transform_indices = @transform_0, window_bounds = array<i64: 8, 32>}, {transform_indices = @transform_1, window_bounds = array<i64: 32, 256>}, {pipeline_mode = #tpu.pipeline_mode<synchronous>, transform_indices = @transform_2, window_bounds = array<i64: 8, 2>}, {transform_indices = @transform_3, window_bounds = array<i64: 8, 256>}]} {
    %c0 = arith.constant 0 : index
    %c0_0 = arith.constant 0 : index
    %0 = vector.load %arg1[%c0, %c0_0] : memref<8x32xbf16, #tpu.memory_space<vmem>>, vector<8x32xbf16>
    %c0_1 = arith.constant 0 : index
    %c0_2 = arith.constant 0 : index
    %1 = vector.load %arg2[%c0_1, %c0_2] : memref<32x256xbf16, #tpu.memory_space<vmem>>, vector<32x256xbf16>
    %cst = arith.constant dense<0.000000e+00> : vector<8x256xf32>
    %2 = tpu.matmul %0, %1, %cst {dimension_numbers = #tpu.dot_dimension_numbers<[1], [0], [0], [1], [0, 0, 1, 1], [], []>} : vector<8x32xbf16>, vector<32x256xbf16>, vector<8x256xf32> -> vector<8x256xf32>
    %c0_3 = arith.constant 0 : index
    %c0_4 = arith.constant 0 : index
    %3 = vector.load %arg3[%c0_3, %c0_4] : memref<8x2xf32, #tpu.memory_space<vmem>>, vector<8x1xf32>
    %4 = vector.broadcast %3 : vector<8x1xf32> to vector<8x256xf32>
    %5 = arith.addf %2, %4 : vector<8x256xf32>
    %cst_5 = arith.constant 0.000000e+00 : f32
    %6 = vector.broadcast %cst_5 : f32 to vector<8x256xf32>
    %7 = arith.cmpf ogt, %5, %6 : vector<8x256xf32>
    %c0_6 = arith.constant 0 : index
    %c1 = arith.constant 1 : index
    %8 = vector.load %arg3[%c0_6, %c1] : memref<8x2xf32, #tpu.memory_space<vmem>>, vector<8x1xf32>
    %9 = vector.broadcast %8 : vector<8x1xf32> to vector<8x256xf32>
    %10 = arith.mulf %9, %5 : vector<8x256xf32>
    %11 = arith.select %7, %5, %10 : vector<8x256xi1>, vector<8x256xf32>
    %c0_7 = arith.constant 0 : index
    %c0_8 = arith.constant 0 : index
    %12 = vector.load %arg4[%c0_7, %c0_8] : memref<8x256xf32, #tpu.memory_space<vmem>>, vector<8x256xf32>
    tpu.vector_store %arg4[%c0_7, %c0_8], %11 {strides = array<i32>} : memref<8x256xf32, #tpu.memory_space<vmem>>, vector<8x256xf32>,
    return
  }
  func.func @transform_0(%arg0: i32) -> (i32, i32) {
    %c0_i32 = arith.constant 0 : i32
    %c0_i32_0 = arith.constant 0 : i32
    %c0_i32_1 = arith.constant 0 : i32
    return %c0_i32, %c0_i32_0 : i32, i32
  }
  func.func @transform_1(%arg0: i32) -> (i32, i32) {
    %c0_i32 = arith.constant 0 : i32
    %c0_i32_0 = arith.constant 0 : i32
    return %c0_i32, %arg0 : i32, i32
  }
  func.func @transform_2(%arg0: i32) -> (i32, i32) {
    %c0_i32 = arith.constant 0 : i32
    %c0_i32_0 = arith.constant 0 : i32
    %c0_i32_1 = arith.constant 0 : i32
    return %c0_i32, %c0_i32_0 : i32, i32
  }
  func.func @transform_3(%arg0: i32) -> (i32, i32) {
    %c0_i32 = arith.constant 0 : i32
    %c0_i32_0 = arith.constant 0 : i32
    return %c0_i32, %arg0 : i32, i32
  }
}

module attributes {stable_mosaic.version = 11 : i64} {
  func.func @_fused_mm_kernel(%arg0: i32, %arg1: memref<16x128xbf16, #tpu.memory_space<vmem>>, %arg2: memref<128x128xbf16, #tpu.memory_space<vmem>>, %arg3: memref<16x2xf32, #tpu.memory_space<vmem>>, %arg4: memref<16x128xf32, #tpu.memory_space<vmem>>) attributes {dimension_semantics = [#tpu.dimension_semantics<parallel>], iteration_bounds = array<i64: 1>, scalar_prefetch = 0 : i64, scratch_operands = 0 : i64, tpu.core_type = #tpu.core_type<tc>, window_params = [{pipeline_mode = #tpu.pipeline_mode<synchronous>, transform_indices = @transform_0, window_bounds = array<i64: 16, 128>}, {transform_indices = @transform_1, window_bounds = array<i64: 128, 128>}, {pipeline_mode = #tpu.pipeline_mode<synchronous>, transform_indices = @transform_2, window_bounds = array<i64: 16, 2>}, {transform_indices = @transform_3, window_bounds = array<i64: 16, 128>}]} {
    %c0 = arith.constant 0 : index
    %c0_0 = arith.constant 0 : index
    %0 = vector.load %arg1[%c0, %c0_0] : memref<16x128xbf16, #tpu.memory_space<vmem>>, vector<16x128xbf16>
    %c0_1 = arith.constant 0 : index
    %c0_2 = arith.constant 0 : index
    %1 = vector.load %arg2[%c0_1, %c0_2] : memref<128x128xbf16, #tpu.memory_space<vmem>>, vector<128x128xbf16>
    %cst = arith.constant dense<0.000000e+00> : vector<16x128xf32>
    %2 = tpu.matmul %0, %1, %cst {dimension_numbers = #tpu.dot_dimension_numbers<[1], [0], [0], [1], [0, 0, 1, 1], [], []>} : vector<16x128xbf16>, vector<128x128xbf16>, vector<16x128xf32> -> vector<16x128xf32>
    %c0_3 = arith.constant 0 : index
    %c0_4 = arith.constant 0 : index
    %3 = vector.load %arg3[%c0_3, %c0_4] : memref<16x2xf32, #tpu.memory_space<vmem>>, vector<16x1xf32>
    %4 = vector.broadcast %3 : vector<16x1xf32> to vector<16x128xf32>
    %5 = arith.addf %2, %4 : vector<16x128xf32>
    %cst_5 = arith.constant 0.000000e+00 : f32
    %6 = vector.broadcast %cst_5 : f32 to vector<16x128xf32>
    %7 = arith.cmpf ogt, %5, %6 : vector<16x128xf32>
    %c0_6 = arith.constant 0 : index
    %c1 = arith.constant 1 : index
    %8 = vector.load %arg3[%c0_6, %c1] : memref<16x2xf32, #tpu.memory_space<vmem>>, vector<16x1xf32>
    %9 = vector.broadcast %8 : vector<16x1xf32> to vector<16x128xf32>
    %10 = arith.mulf %9, %5 : vector<16x128xf32>
    %11 = arith.select %7, %5, %10 : vector<16x128xi1>, vector<16x128xf32>
    %c0_7 = arith.constant 0 : index
    %c0_8 = arith.constant 0 : index
    %12 = vector.load %arg4[%c0_7, %c0_8] : memref<16x128xf32, #tpu.memory_space<vmem>>, vector<16x128xf32>
    tpu.vector_store %arg4[%c0_7, %c0_8], %11 {strides = array<i32>} : memref<16x128xf32, #tpu.memory_space<vmem>>, vector<16x128xf32>,
    return
  }
  func.func @transform_0(%arg0: i32) -> (i32, i32) {
    %c0_i32 = arith.constant 0 : i32
    %c0_i32_0 = arith.constant 0 : i32
    %c0_i32_1 = arith.constant 0 : i32
    return %c0_i32, %c0_i32_0 : i32, i32
  }
  func.func @transform_1(%arg0: i32) -> (i32, i32) {
    %c0_i32 = arith.constant 0 : i32
    %c0_i32_0 = arith.constant 0 : i32
    return %c0_i32, %arg0 : i32, i32
  }
  func.func @transform_2(%arg0: i32) -> (i32, i32) {
    %c0_i32 = arith.constant 0 : i32
    %c0_i32_0 = arith.constant 0 : i32
    %c0_i32_1 = arith.constant 0 : i32
    return %c0_i32, %c0_i32_0 : i32, i32
  }
  func.func @transform_3(%arg0: i32) -> (i32, i32) {
    %c0_i32 = arith.constant 0 : i32
    %c0_i32_0 = arith.constant 0 : i32
    return %c0_i32, %arg0 : i32, i32
  }
}

module attributes {stable_mosaic.version = 11 : i64} {
  func.func @_fused_mm_kernel(%arg0: i32, %arg1: memref<16x144xbf16, #tpu.memory_space<vmem>>, %arg2: memref<144x128xbf16, #tpu.memory_space<vmem>>, %arg3: memref<16x2xf32, #tpu.memory_space<vmem>>, %arg4: memref<16x128xf32, #tpu.memory_space<vmem>>) attributes {dimension_semantics = [#tpu.dimension_semantics<parallel>], iteration_bounds = array<i64: 1>, scalar_prefetch = 0 : i64, scratch_operands = 0 : i64, tpu.core_type = #tpu.core_type<tc>, window_params = [{pipeline_mode = #tpu.pipeline_mode<synchronous>, transform_indices = @transform_0, window_bounds = array<i64: 16, 144>}, {transform_indices = @transform_1, window_bounds = array<i64: 144, 128>}, {pipeline_mode = #tpu.pipeline_mode<synchronous>, transform_indices = @transform_2, window_bounds = array<i64: 16, 2>}, {transform_indices = @transform_3, window_bounds = array<i64: 16, 128>}]} {
    %c0 = arith.constant 0 : index
    %c0_0 = arith.constant 0 : index
    %0 = vector.load %arg1[%c0, %c0_0] : memref<16x144xbf16, #tpu.memory_space<vmem>>, vector<16x144xbf16>
    %c0_1 = arith.constant 0 : index
    %c0_2 = arith.constant 0 : index
    %1 = vector.load %arg2[%c0_1, %c0_2] : memref<144x128xbf16, #tpu.memory_space<vmem>>, vector<144x128xbf16>
    %cst = arith.constant dense<0.000000e+00> : vector<16x128xf32>
    %2 = tpu.matmul %0, %1, %cst {dimension_numbers = #tpu.dot_dimension_numbers<[1], [0], [0], [1], [0, 0, 1, 1], [], []>} : vector<16x144xbf16>, vector<144x128xbf16>, vector<16x128xf32> -> vector<16x128xf32>
    %c0_3 = arith.constant 0 : index
    %c0_4 = arith.constant 0 : index
    %3 = vector.load %arg3[%c0_3, %c0_4] : memref<16x2xf32, #tpu.memory_space<vmem>>, vector<16x1xf32>
    %4 = vector.broadcast %3 : vector<16x1xf32> to vector<16x128xf32>
    %5 = arith.addf %2, %4 : vector<16x128xf32>
    %cst_5 = arith.constant 0.000000e+00 : f32
    %6 = vector.broadcast %cst_5 : f32 to vector<16x128xf32>
    %7 = arith.cmpf ogt, %5, %6 : vector<16x128xf32>
    %c0_6 = arith.constant 0 : index
    %c1 = arith.constant 1 : index
    %8 = vector.load %arg3[%c0_6, %c1] : memref<16x2xf32, #tpu.memory_space<vmem>>, vector<16x1xf32>
    %9 = vector.broadcast %8 : vector<16x1xf32> to vector<16x128xf32>
    %10 = arith.mulf %9, %5 : vector<16x128xf32>
    %11 = arith.select %7, %5, %10 : vector<16x128xi1>, vector<16x128xf32>
    %c0_7 = arith.constant 0 : index
    %c0_8 = arith.constant 0 : index
    %12 = vector.load %arg4[%c0_7, %c0_8] : memref<16x128xf32, #tpu.memory_space<vmem>>, vector<16x128xf32>
    tpu.vector_store %arg4[%c0_7, %c0_8], %11 {strides = array<i32>} : memref<16x128xf32, #tpu.memory_space<vmem>>, vector<16x128xf32>,
    return
  }
  func.func @transform_0(%arg0: i32) -> (i32, i32) {
    %c0_i32 = arith.constant 0 : i32
    %c0_i32_0 = arith.constant 0 : i32
    %c0_i32_1 = arith.constant 0 : i32
    return %c0_i32, %c0_i32_0 : i32, i32
  }
  func.func @transform_1(%arg0: i32) -> (i32, i32) {
    %c0_i32 = arith.constant 0 : i32
    %c0_i32_0 = arith.constant 0 : i32
    return %c0_i32, %arg0 : i32, i32
  }
  func.func @transform_2(%arg0: i32) -> (i32, i32) {
    %c0_i32 = arith.constant 0 : i32
    %c0_i32_0 = arith.constant 0 : i32
    %c0_i32_1 = arith.constant 0 : i32
    return %c0_i32, %c0_i32_0 : i32, i32
  }
  func.func @transform_3(%arg0: i32) -> (i32, i32) {
    %c0_i32 = arith.constant 0 : i32
    %c0_i32_0 = arith.constant 0 : i32
    return %c0_i32, %arg0 : i32, i32
  }
}

module attributes {stable_mosaic.version = 11 : i64} {
  func.func @_fused_mm_kernel(%arg0: i32, %arg1: memref<64x16xbf16, #tpu.memory_space<vmem>>, %arg2: memref<16x128xbf16, #tpu.memory_space<vmem>>, %arg3: memref<64x2xf32, #tpu.memory_space<vmem>>, %arg4: memref<64x128xf32, #tpu.memory_space<vmem>>, %arg5: memref<64x128xf32, #tpu.memory_space<vmem>>) attributes {dimension_semantics = [#tpu.dimension_semantics<parallel>], iteration_bounds = array<i64: 1>, scalar_prefetch = 0 : i64, scratch_operands = 0 : i64, tpu.core_type = #tpu.core_type<tc>, window_params = [{pipeline_mode = #tpu.pipeline_mode<synchronous>, transform_indices = @transform_0, window_bounds = array<i64: 64, 16>}, {transform_indices = @transform_1, window_bounds = array<i64: 16, 128>}, {pipeline_mode = #tpu.pipeline_mode<synchronous>, transform_indices = @transform_2, window_bounds = array<i64: 64, 2>}, {transform_indices = @transform_3, window_bounds = array<i64: 64, 128>}, {transform_indices = @transform_4, window_bounds = array<i64: 64, 128>}]} {
    %c0 = arith.constant 0 : index
    %c0_0 = arith.constant 0 : index
    %0 = vector.load %arg1[%c0, %c0_0] : memref<64x16xbf16, #tpu.memory_space<vmem>>, vector<64x16xbf16>
    %c0_1 = arith.constant 0 : index
    %c0_2 = arith.constant 0 : index
    %1 = vector.load %arg2[%c0_1, %c0_2] : memref<16x128xbf16, #tpu.memory_space<vmem>>, vector<16x128xbf16>
    %cst = arith.constant dense<0.000000e+00> : vector<64x128xf32>
    %2 = tpu.matmul %0, %1, %cst {dimension_numbers = #tpu.dot_dimension_numbers<[1], [0], [0], [1], [0, 0, 1, 1], [], []>} : vector<64x16xbf16>, vector<16x128xbf16>, vector<64x128xf32> -> vector<64x128xf32>
    %c0_3 = arith.constant 0 : index
    %c0_4 = arith.constant 0 : index
    %3 = vector.load %arg3[%c0_3, %c0_4] : memref<64x2xf32, #tpu.memory_space<vmem>>, vector<64x1xf32>
    %4 = vector.broadcast %3 : vector<64x1xf32> to vector<64x128xf32>
    %5 = arith.addf %2, %4 : vector<64x128xf32>
    %cst_5 = arith.constant 0.000000e+00 : f32
    %6 = vector.broadcast %cst_5 : f32 to vector<64x128xf32>
    %7 = arith.cmpf ogt, %5, %6 : vector<64x128xf32>
    %c0_6 = arith.constant 0 : index
    %c1 = arith.constant 1 : index
    %8 = vector.load %arg3[%c0_6, %c1] : memref<64x2xf32, #tpu.memory_space<vmem>>, vector<64x1xf32>
    %9 = vector.broadcast %8 : vector<64x1xf32> to vector<64x128xf32>
    %10 = arith.mulf %9, %5 : vector<64x128xf32>
    %11 = arith.select %7, %5, %10 : vector<64x128xi1>, vector<64x128xf32>
    %c0_7 = arith.constant 0 : index
    %c0_8 = arith.constant 0 : index
    %12 = vector.load %arg4[%c0_7, %c0_8] : memref<64x128xf32, #tpu.memory_space<vmem>>, vector<64x128xf32>
    %13 = arith.addf %11, %12 : vector<64x128xf32>
    %cst_9 = arith.constant 0.000000e+00 : f32
    %14 = vector.broadcast %cst_9 : f32 to vector<64x128xf32>
    %15 = arith.maximumf %13, %14 : vector<64x128xf32>
    %c0_10 = arith.constant 0 : index
    %c0_11 = arith.constant 0 : index
    %16 = vector.load %arg5[%c0_10, %c0_11] : memref<64x128xf32, #tpu.memory_space<vmem>>, vector<64x128xf32>
    tpu.vector_store %arg5[%c0_10, %c0_11], %15 {strides = array<i32>} : memref<64x128xf32, #tpu.memory_space<vmem>>, vector<64x128xf32>,
    return
  }
  func.func @transform_0(%arg0: i32) -> (i32, i32) {
    %c0_i32 = arith.constant 0 : i32
    %c0_i32_0 = arith.constant 0 : i32
    %c0_i32_1 = arith.constant 0 : i32
    return %c0_i32, %c0_i32_0 : i32, i32
  }
  func.func @transform_1(%arg0: i32) -> (i32, i32) {
    %c0_i32 = arith.constant 0 : i32
    %c0_i32_0 = arith.constant 0 : i32
    return %c0_i32, %arg0 : i32, i32
  }
  func.func @transform_2(%arg0: i32) -> (i32, i32) {
    %c0_i32 = arith.constant 0 : i32
    %c0_i32_0 = arith.constant 0 : i32
    %c0_i32_1 = arith.constant 0 : i32
    return %c0_i32, %c0_i32_0 : i32, i32
  }
  func.func @transform_3(%arg0: i32) -> (i32, i32) {
    %c0_i32 = arith.constant 0 : i32
    %c0_i32_0 = arith.constant 0 : i32
    return %c0_i32, %arg0 : i32, i32
  }
  func.func @transform_4(%arg0: i32) -> (i32, i32) {
    %c0_i32 = arith.constant 0 : i32
    %c0_i32_0 = arith.constant 0 : i32
    return %c0_i32, %arg0 : i32, i32
  }
}

module attributes {stable_mosaic.version = 11 : i64} {
  func.func @_fused_mm_kernel(%arg0: i32, %arg1: memref<16x64xbf16, #tpu.memory_space<vmem>>, %arg2: memref<64x128xbf16, #tpu.memory_space<vmem>>, %arg3: memref<16x2xf32, #tpu.memory_space<vmem>>, %arg4: memref<16x128xf32, #tpu.memory_space<vmem>>) attributes {dimension_semantics = [#tpu.dimension_semantics<parallel>], iteration_bounds = array<i64: 1>, scalar_prefetch = 0 : i64, scratch_operands = 0 : i64, tpu.core_type = #tpu.core_type<tc>, window_params = [{pipeline_mode = #tpu.pipeline_mode<synchronous>, transform_indices = @transform_0, window_bounds = array<i64: 16, 64>}, {transform_indices = @transform_1, window_bounds = array<i64: 64, 128>}, {pipeline_mode = #tpu.pipeline_mode<synchronous>, transform_indices = @transform_2, window_bounds = array<i64: 16, 2>}, {transform_indices = @transform_3, window_bounds = array<i64: 16, 128>}]} {
    %c0 = arith.constant 0 : index
    %c0_0 = arith.constant 0 : index
    %0 = vector.load %arg1[%c0, %c0_0] : memref<16x64xbf16, #tpu.memory_space<vmem>>, vector<16x64xbf16>
    %c0_1 = arith.constant 0 : index
    %c0_2 = arith.constant 0 : index
    %1 = vector.load %arg2[%c0_1, %c0_2] : memref<64x128xbf16, #tpu.memory_space<vmem>>, vector<64x128xbf16>
    %cst = arith.constant dense<0.000000e+00> : vector<16x128xf32>
    %2 = tpu.matmul %0, %1, %cst {dimension_numbers = #tpu.dot_dimension_numbers<[1], [0], [0], [1], [0, 0, 1, 1], [], []>} : vector<16x64xbf16>, vector<64x128xbf16>, vector<16x128xf32> -> vector<16x128xf32>
    %c0_3 = arith.constant 0 : index
    %c0_4 = arith.constant 0 : index
    %3 = vector.load %arg3[%c0_3, %c0_4] : memref<16x2xf32, #tpu.memory_space<vmem>>, vector<16x1xf32>
    %4 = vector.broadcast %3 : vector<16x1xf32> to vector<16x128xf32>
    %5 = arith.addf %2, %4 : vector<16x128xf32>
    %cst_5 = arith.constant 0.000000e+00 : f32
    %6 = vector.broadcast %cst_5 : f32 to vector<16x128xf32>
    %7 = arith.cmpf ogt, %5, %6 : vector<16x128xf32>
    %c0_6 = arith.constant 0 : index
    %c1 = arith.constant 1 : index
    %8 = vector.load %arg3[%c0_6, %c1] : memref<16x2xf32, #tpu.memory_space<vmem>>, vector<16x1xf32>
    %9 = vector.broadcast %8 : vector<16x1xf32> to vector<16x128xf32>
    %10 = arith.mulf %9, %5 : vector<16x128xf32>
    %11 = arith.select %7, %5, %10 : vector<16x128xi1>, vector<16x128xf32>
    %c0_7 = arith.constant 0 : index
    %c0_8 = arith.constant 0 : index
    %12 = vector.load %arg4[%c0_7, %c0_8] : memref<16x128xf32, #tpu.memory_space<vmem>>, vector<16x128xf32>
    tpu.vector_store %arg4[%c0_7, %c0_8], %11 {strides = array<i32>} : memref<16x128xf32, #tpu.memory_space<vmem>>, vector<16x128xf32>,
    return
  }
  func.func @transform_0(%arg0: i32) -> (i32, i32) {
    %c0_i32 = arith.constant 0 : i32
    %c0_i32_0 = arith.constant 0 : i32
    %c0_i32_1 = arith.constant 0 : i32
    return %c0_i32, %c0_i32_0 : i32, i32
  }
  func.func @transform_1(%arg0: i32) -> (i32, i32) {
    %c0_i32 = arith.constant 0 : i32
    %c0_i32_0 = arith.constant 0 : i32
    return %c0_i32, %arg0 : i32, i32
  }
  func.func @transform_2(%arg0: i32) -> (i32, i32) {
    %c0_i32 = arith.constant 0 : i32
    %c0_i32_0 = arith.constant 0 : i32
    %c0_i32_1 = arith.constant 0 : i32
    return %c0_i32, %c0_i32_0 : i32, i32
  }
  func.func @transform_3(%arg0: i32) -> (i32, i32) {
    %c0_i32 = arith.constant 0 : i32
    %c0_i32_0 = arith.constant 0 : i32
    return %c0_i32, %arg0 : i32, i32
  }
}

module attributes {stable_mosaic.version = 11 : i64} {
  func.func @_fused_mm_kernel(%arg0: i32, %arg1: memref<16x80xbf16, #tpu.memory_space<vmem>>, %arg2: memref<80x128xbf16, #tpu.memory_space<vmem>>, %arg3: memref<16x2xf32, #tpu.memory_space<vmem>>, %arg4: memref<16x128xf32, #tpu.memory_space<vmem>>) attributes {dimension_semantics = [#tpu.dimension_semantics<parallel>], iteration_bounds = array<i64: 1>, scalar_prefetch = 0 : i64, scratch_operands = 0 : i64, tpu.core_type = #tpu.core_type<tc>, window_params = [{pipeline_mode = #tpu.pipeline_mode<synchronous>, transform_indices = @transform_0, window_bounds = array<i64: 16, 80>}, {transform_indices = @transform_1, window_bounds = array<i64: 80, 128>}, {pipeline_mode = #tpu.pipeline_mode<synchronous>, transform_indices = @transform_2, window_bounds = array<i64: 16, 2>}, {transform_indices = @transform_3, window_bounds = array<i64: 16, 128>}]} {
    %c0 = arith.constant 0 : index
    %c0_0 = arith.constant 0 : index
    %0 = vector.load %arg1[%c0, %c0_0] : memref<16x80xbf16, #tpu.memory_space<vmem>>, vector<16x80xbf16>
    %c0_1 = arith.constant 0 : index
    %c0_2 = arith.constant 0 : index
    %1 = vector.load %arg2[%c0_1, %c0_2] : memref<80x128xbf16, #tpu.memory_space<vmem>>, vector<80x128xbf16>
    %cst = arith.constant dense<0.000000e+00> : vector<16x128xf32>
    %2 = tpu.matmul %0, %1, %cst {dimension_numbers = #tpu.dot_dimension_numbers<[1], [0], [0], [1], [0, 0, 1, 1], [], []>} : vector<16x80xbf16>, vector<80x128xbf16>, vector<16x128xf32> -> vector<16x128xf32>
    %c0_3 = arith.constant 0 : index
    %c0_4 = arith.constant 0 : index
    %3 = vector.load %arg3[%c0_3, %c0_4] : memref<16x2xf32, #tpu.memory_space<vmem>>, vector<16x1xf32>
    %4 = vector.broadcast %3 : vector<16x1xf32> to vector<16x128xf32>
    %5 = arith.addf %2, %4 : vector<16x128xf32>
    %c0_5 = arith.constant 0 : index
    %c0_6 = arith.constant 0 : index
    %6 = vector.load %arg4[%c0_5, %c0_6] : memref<16x128xf32, #tpu.memory_space<vmem>>, vector<16x128xf32>
    tpu.vector_store %arg4[%c0_5, %c0_6], %5 {strides = array<i32>} : memref<16x128xf32, #tpu.memory_space<vmem>>, vector<16x128xf32>,
    return
  }
  func.func @transform_0(%arg0: i32) -> (i32, i32) {
    %c0_i32 = arith.constant 0 : i32
    %c0_i32_0 = arith.constant 0 : i32
    %c0_i32_1 = arith.constant 0 : i32
    return %c0_i32, %c0_i32_0 : i32, i32
  }
  func.func @transform_1(%arg0: i32) -> (i32, i32) {
    %c0_i32 = arith.constant 0 : i32
    %c0_i32_0 = arith.constant 0 : i32
    return %c0_i32, %arg0 : i32, i32
  }
  func.func @transform_2(%arg0: i32) -> (i32, i32) {
    %c0_i32 = arith.constant 0 : i32
    %c0_i32_0 = arith.constant 0 : i32
    %c0_i32_1 = arith.constant 0 : i32
    return %c0_i32, %c0_i32_0 : i32, i32
  }
  func.func @transform_3(%arg0: i32) -> (i32, i32) {
    %c0_i32 = arith.constant 0 : i32
    %c0_i32_0 = arith.constant 0 : i32
    return %c0_i32, %arg0 : i32, i32
  }
}

module attributes {stable_mosaic.version = 11 : i64} {
  func.func @_fused_mm_kernel(%arg0: i32, %arg1: memref<16x80xbf16, #tpu.memory_space<vmem>>, %arg2: memref<80x128xbf16, #tpu.memory_space<vmem>>, %arg3: memref<16x2xf32, #tpu.memory_space<vmem>>, %arg4: memref<16x128xf32, #tpu.memory_space<vmem>>) attributes {dimension_semantics = [#tpu.dimension_semantics<parallel>], iteration_bounds = array<i64: 1>, scalar_prefetch = 0 : i64, scratch_operands = 0 : i64, tpu.core_type = #tpu.core_type<tc>, window_params = [{pipeline_mode = #tpu.pipeline_mode<synchronous>, transform_indices = @transform_0, window_bounds = array<i64: 16, 80>}, {transform_indices = @transform_1, window_bounds = array<i64: 80, 128>}, {pipeline_mode = #tpu.pipeline_mode<synchronous>, transform_indices = @transform_2, window_bounds = array<i64: 16, 2>}, {transform_indices = @transform_3, window_bounds = array<i64: 16, 128>}]} {
    %c0 = arith.constant 0 : index
    %c0_0 = arith.constant 0 : index
    %0 = vector.load %arg1[%c0, %c0_0] : memref<16x80xbf16, #tpu.memory_space<vmem>>, vector<16x80xbf16>
    %c0_1 = arith.constant 0 : index
    %c0_2 = arith.constant 0 : index
    %1 = vector.load %arg2[%c0_1, %c0_2] : memref<80x128xbf16, #tpu.memory_space<vmem>>, vector<80x128xbf16>
    %cst = arith.constant dense<0.000000e+00> : vector<16x128xf32>
    %2 = tpu.matmul %0, %1, %cst {dimension_numbers = #tpu.dot_dimension_numbers<[1], [0], [0], [1], [0, 0, 1, 1], [], []>} : vector<16x80xbf16>, vector<80x128xbf16>, vector<16x128xf32> -> vector<16x128xf32>
    %c0_3 = arith.constant 0 : index
    %c0_4 = arith.constant 0 : index
    %3 = vector.load %arg3[%c0_3, %c0_4] : memref<16x2xf32, #tpu.memory_space<vmem>>, vector<16x1xf32>
    %4 = vector.broadcast %3 : vector<16x1xf32> to vector<16x128xf32>
    %5 = arith.addf %2, %4 : vector<16x128xf32>
    %cst_5 = arith.constant 0.000000e+00 : f32
    %6 = vector.broadcast %cst_5 : f32 to vector<16x128xf32>
    %7 = arith.cmpf ogt, %5, %6 : vector<16x128xf32>
    %c0_6 = arith.constant 0 : index
    %c1 = arith.constant 1 : index
    %8 = vector.load %arg3[%c0_6, %c1] : memref<16x2xf32, #tpu.memory_space<vmem>>, vector<16x1xf32>
    %9 = vector.broadcast %8 : vector<16x1xf32> to vector<16x128xf32>
    %10 = arith.mulf %9, %5 : vector<16x128xf32>
    %11 = arith.select %7, %5, %10 : vector<16x128xi1>, vector<16x128xf32>
    %c0_7 = arith.constant 0 : index
    %c0_8 = arith.constant 0 : index
    %12 = vector.load %arg4[%c0_7, %c0_8] : memref<16x128xf32, #tpu.memory_space<vmem>>, vector<16x128xf32>
    tpu.vector_store %arg4[%c0_7, %c0_8], %11 {strides = array<i32>} : memref<16x128xf32, #tpu.memory_space<vmem>>, vector<16x128xf32>,
    return
  }
  func.func @transform_0(%arg0: i32) -> (i32, i32) {
    %c0_i32 = arith.constant 0 : i32
    %c0_i32_0 = arith.constant 0 : i32
    %c0_i32_1 = arith.constant 0 : i32
    return %c0_i32, %c0_i32_0 : i32, i32
  }
  func.func @transform_1(%arg0: i32) -> (i32, i32) {
    %c0_i32 = arith.constant 0 : i32
    %c0_i32_0 = arith.constant 0 : i32
    return %c0_i32, %arg0 : i32, i32
  }
  func.func @transform_2(%arg0: i32) -> (i32, i32) {
    %c0_i32 = arith.constant 0 : i32
    %c0_i32_0 = arith.constant 0 : i32
    %c0_i32_1 = arith.constant 0 : i32
    return %c0_i32, %c0_i32_0 : i32, i32
  }
  func.func @transform_3(%arg0: i32) -> (i32, i32) {
    %c0_i32 = arith.constant 0 : i32
    %c0_i32_0 = arith.constant 0 : i32
    return %c0_i32, %arg0 : i32, i32
  }
}

module attributes {stable_mosaic.version = 11 : i64} {
  func.func @_fused_mm_kernel(%arg0: i32, %arg1: memref<4x64xbf16, #tpu.memory_space<vmem>>, %arg2: memref<64x128xbf16, #tpu.memory_space<vmem>>, %arg3: memref<4x2xf32, #tpu.memory_space<vmem>>, %arg4: memref<4x128xf32, #tpu.memory_space<vmem>>) attributes {dimension_semantics = [#tpu.dimension_semantics<parallel>], iteration_bounds = array<i64: 1>, scalar_prefetch = 0 : i64, scratch_operands = 0 : i64, tpu.core_type = #tpu.core_type<tc>, window_params = [{pipeline_mode = #tpu.pipeline_mode<synchronous>, transform_indices = @transform_0, window_bounds = array<i64: 4, 64>}, {transform_indices = @transform_1, window_bounds = array<i64: 64, 128>}, {pipeline_mode = #tpu.pipeline_mode<synchronous>, transform_indices = @transform_2, window_bounds = array<i64: 4, 2>}, {transform_indices = @transform_3, window_bounds = array<i64: 4, 128>}]} {
    %c0 = arith.constant 0 : index
    %c0_0 = arith.constant 0 : index
    %0 = vector.load %arg1[%c0, %c0_0] : memref<4x64xbf16, #tpu.memory_space<vmem>>, vector<4x64xbf16>
    %c0_1 = arith.constant 0 : index
    %c0_2 = arith.constant 0 : index
    %1 = vector.load %arg2[%c0_1, %c0_2] : memref<64x128xbf16, #tpu.memory_space<vmem>>, vector<64x128xbf16>
    %cst = arith.constant dense<0.000000e+00> : vector<4x128xf32>
    %2 = tpu.matmul %0, %1, %cst {dimension_numbers = #tpu.dot_dimension_numbers<[1], [0], [0], [1], [0, 0, 1, 1], [], []>} : vector<4x64xbf16>, vector<64x128xbf16>, vector<4x128xf32> -> vector<4x128xf32>
    %c0_3 = arith.constant 0 : index
    %c0_4 = arith.constant 0 : index
    %3 = vector.load %arg3[%c0_3, %c0_4] : memref<4x2xf32, #tpu.memory_space<vmem>>, vector<4x1xf32>
    %4 = vector.broadcast %3 : vector<4x1xf32> to vector<4x128xf32>
    %5 = arith.addf %2, %4 : vector<4x128xf32>
    %c0_5 = arith.constant 0 : index
    %c0_6 = arith.constant 0 : index
    %6 = vector.load %arg4[%c0_5, %c0_6] : memref<4x128xf32, #tpu.memory_space<vmem>>, vector<4x128xf32>
    tpu.vector_store %arg4[%c0_5, %c0_6], %5 {strides = array<i32>} : memref<4x128xf32, #tpu.memory_space<vmem>>, vector<4x128xf32>,
    return
  }
  func.func @transform_0(%arg0: i32) -> (i32, i32) {
    %c0_i32 = arith.constant 0 : i32
    %c0_i32_0 = arith.constant 0 : i32
    %c0_i32_1 = arith.constant 0 : i32
    return %c0_i32, %c0_i32_0 : i32, i32
  }
  func.func @transform_1(%arg0: i32) -> (i32, i32) {
    %c0_i32 = arith.constant 0 : i32
    %c0_i32_0 = arith.constant 0 : i32
    return %c0_i32, %arg0 : i32, i32
  }
  func.func @transform_2(%arg0: i32) -> (i32, i32) {
    %c0_i32 = arith.constant 0 : i32
    %c0_i32_0 = arith.constant 0 : i32
    %c0_i32_1 = arith.constant 0 : i32
    return %c0_i32, %c0_i32_0 : i32, i32
  }
  func.func @transform_3(%arg0: i32) -> (i32, i32) {
    %c0_i32 = arith.constant 0 : i32
    %c0_i32_0 = arith.constant 0 : i32
    return %c0_i32, %arg0 : i32, i32
  }
}

</mosaic_0001>

<bundles_post_ra>
// kernel: _lambda_.72
= control target key start
LH: loop header
LB: loop body
LE: loop exit
PB: predicated region body
PF: predicated region fallthrough
CT: control target
= control target key end

     0   :  { %8 = vsyncpa [#allocation3], 0  ;;  %s911_s0 = inlined_call_operand.hbm [shape: bf16[13,27], index: 0, kind: input, shape index: {}]   ;;  %s912_s1 = inlined_call_operand.vmem [shape: bf16[27,2048], index: 1, kind: input, shape index: {}]   ;;  %s913_s2 = inlined_call_operand.hbm [shape: f32[13,2], index: 2, kind: input, shape index: {}]   ;;  %s914_s3 = inlined_call_operand.vmem [shape: f32[13,2048], index: 3, kind: output, shape index: {}]  }
   0x1   :  { %9 = vsyncpa [#allocation6], 0  ;;  %s780_s12 = smov 0   ;;  %s782_s13 = smov 0  }
   0x2   :  { %s784_s14 = smov 0  }
   0x3 LB: > { %s796_s15 = sadd.s32 4294967295, %s749_s14   ;;  %s799_s16 = sadd.s32 1, %s749_s14   ;;  %s749_s14 = sphi %s784_s14, %s920_s14   ;;  %s745_s13 = sphi %s782_s13, %s919_s13   ;;  %s741_s12 = sphi %s780_s12, %s918_s12  }
   0x4   : > { %s40_s17 = ssub.s32 %s749_s14, %s799_s16  ;;  %s43_s18 = sadd.s32 1, %s745_s13 }
   0x5   : > { %p41_p0 = scmp.eq.s32.totalorder %s40_s17, 0  ;;  %p50_p1 = scmp.ne.s32.totalorder %s745_s13, %s741_s12 }
   0x6   : > { %p51_p2 = scmp.eq.s32.totalorder %s749_s14, 0  ;;  %p101_p3 = scmp.eq.s32.totalorder %s796_s15, 3 }
   0x7   : > { %s809_s19 = scalar_select %p41_p0, %s745_s13, %s43_s18  }
   0x8   : > { %p811_p4 = por %p51_p2, %p50_p1  ;;  %p815_p5 = por %p101_p3, %p50_p1 }
   0x9   : > { %p536_p6 = scmp.ge.s32.totalorder %s749_s14, 1  ;;  %p114_p7 = scmp.lt.s32.totalorder %s749_s14, 5 }
   0xa   : > { %p619_p8 = scmp.eq.s32.totalorder %s796_s15, 0  ;;  %s125_s25 = sshll.u32 %s911_s0, 4  ;;  %s126_s25 = int_to_ptr.hbm [resolvable:$true] %s125_s25 }
   0xb   : > { %p822_p9 = pnand %p536_p6, %p114_p7  ;;  %s751_s26 = smov [#allocation2]  }
   0xc   : > { %s127_s27 = sshll.u32 %s751_s26, 4  ;;  %s139_s30 = sshll.u32 %s913_s2, 4  ;;  %s128_s27 = int_to_ptr.vmem [resolvable:$true] %s127_s27  ;;  %s140_s30 = int_to_ptr.hbm [resolvable:$true] %s139_s30 }
   0xd   : > { %p612_p10 = pneg %p822_p9  ;;  %s752_s4 = smov 64  }
   0xe   : > { %s753_s5 = smov 4   ;;  %s754_s6 = smov [#allocation5]  }
   0xf   : > { %p613_p11 = pnand %p619_p8, %p612_p10  ;;  %s141_s7 = sshll.u32 %s754_s6, 4  ;;  %s142_s7 = int_to_ptr.vmem [resolvable:$true] %s141_s7 }
  0x10   : > { %s755_s8 = smov 128   ;;  %s756_s9 = smov 8  }
  0x11   : > { %615 = dma.hbm_to_vmem [thread:$0]  (!%p613_p11), %s126_s25, 128, %s128_s27, [#allocation3], %s752_s4, %s752_s4, %s753_s5  }
  0x12   : > { %618 = dma.hbm_to_vmem [thread:$0]  (!%p613_p11), %s140_s30, 256, %s142_s7, [#allocation6], %s755_s8, %s755_s8, %s756_s9  }
  0x13   : > { %p539_p12 = scmp.ge.s32.totalorder %s749_s14, 4 }
  0x15   : > { %151 = sbr.rel (%p539_p12) target bundleno = 38 (0x26), region = 24 }
  0x1a   : > { %154 = sbr.rel (!%p811_p4) target bundleno = 38 (0x26), region = 28  ;;  %s156_s10 = sand.u32 (%p811_p4), 1, %s745_s13  }
  0x1b   : > { %s593_s11 = sshll.u32 (%p811_p4), %s749_s14, 4  ;;  %s540_s17 = sshll.u32 (%p811_p4), %s156_s10, 6 }
  0x1c   : > { %s161_s24 = scalar_lea.vmem (%p811_p4), %s912_s1, %s593_s11  ;;  %s158_s25 = scalar_lea.vmem (%p811_p4), [#allocation4], %s540_s17 }
  0x1d   : > { %v174_v0 = vld [vmem:[%s161_s24] sm:$0xff] (%p811_p4)  ;;  %v176_v1 = vld [vmem:[%s161_s24 + $0x8] sm:$0xff] (%p811_p4) }
  0x1e   : > { %v178_v2 = vld [vmem:[%s161_s24 + $0x40] sm:$0xff] (%p811_p4)  ;;  %175 = vst [vmem:[%s158_s25] sm:$0xff] (%p811_p4), %v174_v0  ;;  %v180_v3 = vld [vmem:[%s161_s24 + $0x48] sm:$0xff] (%p811_p4) }
  0x1f   : > { %177 = vst [vmem:[%s158_s25 + $0x8] sm:$0xff] %v176_v1  ;;  %v182_v4 = vld [vmem:[%s161_s24 + $0x80] sm:$0xff]  ;;  %v184_v5 = vld [vmem:[%s161_s24 + $0x88] sm:$0xff] }
  0x20   : > { %179 = vst [vmem:[%s158_s25 + $0x10] sm:$0xff] %v178_v2  ;;  %v186_v6 = vld [vmem:[%s161_s24 + $0xc0] sm:$0xff]  ;;  %v188_v7 = vld [vmem:[%s161_s24 + $0xc8] sm:$0xff] }
  0x21   : > { %181 = vst [vmem:[%s158_s25 + $0x18] sm:$0xff] %v180_v3 }
  0x22   : > { %183 = vst [vmem:[%s158_s25 + $0x20] sm:$0xff] %v182_v4 }
  0x23   : > { %185 = vst [vmem:[%s158_s25 + $0x28] sm:$0xff] %v184_v5 }
  0x24   : > { %187 = vst [vmem:[%s158_s25 + $0x30] sm:$0xff] %v186_v6 }
  0x25   : > { %189 = vst [vmem:[%s158_s25 + $0x38] sm:$0xff] %v188_v7 }
  0x26 PF: > { %198 = sbr.rel (%p822_p9) target bundleno = 218 (0xda), region = 51 }
  0x2b   : > { %732 = dma.done.wait (%p619_p8), [#allocation3], 128  }
  0x2c   : > { %734 = vsyncadd (%p619_p8), [#allocation3], 4294967168  ;;  %s206_s14 = sand.u32 1, %s741_s12  }
  0x2d   : > { %s851_s20 = sshll.u32 %s206_s14, 6 }
  0x2e   : > { %s854_s26 = scalar_lea.vmem [#allocation4], %s851_s20 }
  0x2f   : > { %736 = dma.done.wait (%p619_p8), [#allocation6], 256  }
  0x30   : > { %738 = vsyncadd (%p619_p8), [#allocation6], 4294967040  ;;  %vm303_vm0 = vcmask 1044480   ;;  %v757_v8 = vmov 0   ;;  %v758_v9 = vmov 1   ;;  %vm304_vm1 = vcmask 1045504  }
  0x31   : > { %656 = vset.pattern.permute.xlu0 %v757_v8  ;;  %657 = vset.pattern.permute.xlu1 %v758_v9  ;;  %v759_v10 = vmov 65535   ;;  %v570_v13 = vld [vmem:[%s854_s26 + $0x20] sm:$0xf]  ;;  %v601_v14 = vld [vmem:[%s854_s26 + $0x2c] sm:$0x30]  ;;  %vm299_vm2 = vcmask 220160  }
  0x32   : > { %v305_v11 = vsel %vm303_vm0, 4294967295, %v759_v10  ;;  %v599_v15 = vld [vmem:[%s854_s26 + $0x24] sm:$0xf]  ;;  %v571_v16 = vor.u32 %v601_v14, %v570_v13  ;;  %v572_v17 = vld [vmem:[%s854_s26 + $0x30] sm:$0x30]  ;;  %s877_s12 = scalar_lea.vmem [#allocation7], %s851_s20 }
  0x33   : > { %v306_v12 = vsel %vm304_vm1, %v305_v11, 0  ;;  %v578_v18 = vld [vmem:[%s854_s26 + $0x28] sm:$0xf]  ;;  %v602_v19 = vld [vmem:[%s854_s26 + $0x34] sm:$0x30]  ;;  %v575_v20 = vor.u32 %v599_v15, %v572_v17  ;;  %v246_v42 = vld [vmem:[#allocation5] sm:$0xff] }
  0x34   : > { %v579_v21 = vor.u32 %v602_v19, %v578_v18  ;;  %v600_v22 = vld [vmem:[%s854_s26 + $0x2c] sm:$0xf]  ;;  %v580_v23 = vld [vmem:[%s854_s26 + $0x38] sm:$0x30]  ;;  %v554_v24 = vld [vmem:[%s854_s26] sm:$0xf]  ;;  %v308_v25 = vand.u32 %v571_v16, %v306_v12  ;;  %250 = vperm.xlu0 %656, %v246_v42   ;;  %384 = vperm.xlu1 %657, %v246_v42  }
  0x35   : > { %v583_v26 = vor.u32 %v600_v22, %v580_v23  ;;  %v597_v27 = vld [vmem:[%s854_s26 + $0xc] sm:$0xf0]  ;;  %v595_v28 = vld [vmem:[%s854_s26 + $0x4] sm:$0xf]  ;;  %v556_v29 = vld [vmem:[%s854_s26 + $0x10] sm:$0xf0]  ;;  %v311_v30 = vand.u32 %v575_v20, %v306_v12 }
  0x36   : > { %v314_v31 = vand.u32 %v579_v21, %v306_v12  ;;  %v562_v32 = vld [vmem:[%s854_s26 + $0x8] sm:$0xf]  ;;  %v598_v33 = vld [vmem:[%s854_s26 + $0x14] sm:$0xf0]  ;;  %v596_v34 = vld [vmem:[%s854_s26 + $0xc] sm:$0xf]  ;;  %325 = vmatpush.bf16.msra.mxu0 %v308_v25  ;;  %v555_v36 = vor.u32 %v597_v27, %v554_v24  ;;  %v559_v40 = vor.u32 %v595_v28, %v556_v29 }
  0x37   : > { %v317_v35 = vand.u32 %v583_v26, %v306_v12  ;;  %v564_v37 = vld [vmem:[%s854_s26 + $0x18] sm:$0xf0]  ;;  %v550_v38 = vld [vmem:[#allocation2] sm:$0xf]  ;;  %339 = vmatpush.bf16.msra.mxu1 %v311_v30  ;;  %v563_v41 = vor.u32 %v598_v33, %v562_v32  ;;  %v247_v45 = vld [vmem:[#allocation5 + $0x8] sm:$0x1f] }
  0x38   : > { %v594_v39 = vld [vmem:[#allocation2] sm:$0x70]  ;;  %353 = vmatpush.bf16.msra.mxu2 %v314_v31  ;;  %v567_v43 = vor.u32 %v596_v34, %v564_v37  ;;  %s603_s22 = sshll.u32 (%p815_p5), %s796_s15, 5 }
  0x39   : > { %367 = vmatpush.bf16.msra.mxu3 %v317_v35  ;;  %v551_v44 = vor.u32 %v594_v39, %v550_v38  ;;  %s424_s29 = scalar_lea.vmem (%p815_p5), %s914_s3, %s603_s22 }
  0x3a   : > { %326 = vmatpush.bf16.msra.mxu0 %v555_v36 }
  0x3b   : > { %340 = vmatpush.bf16.msra.mxu1 %v559_v40 }
  0x3c   : > { %354 = vmatpush.bf16.msra.mxu2 %v563_v41  ;;  %255 = vperm.xlu0 %656, %v247_v45  }
  0x3d   : > { %368 = vmatpush.bf16.msra.mxu3 %v567_v43  ;;  %584 = vmatmul.msk.bf16.vlgmr.msra.gmra.mxu0 %vm299_vm2, %v551_v44 }
  0x3e   : > { %585 = vmatmul.msk.bf16.vlgmr.msra.gmra.mxu1 %vm299_vm2, %v551_v44  ;;  %388 = vperm.xlu1 %657, %v247_v45  }
  0x3f   : > { %586 = vmatmul.msk.bf16.vlgmr.msra.gmra.mxu2 %vm299_vm2, %v551_v44 }
  0x40   : > { %587 = vmatmul.msk.bf16.vlgmr.msra.gmra.mxu3 %vm299_vm2, %v551_v44 }
  0x44   : > { %658 = vset.pattern.permute.xlu0 %v758_v9 }
  0xa6   : > { %v251_v46 = vpop.permute.xlu0 %250  ;;  %v385_v47 = vpop.permute.xlu1 %384 }
  0xae   : > { %v256_v56 = vpop.permute.xlu0 %255 }
  0xb0   : > { %v389_v1 = vpop.permute.xlu1 %388 }
  0xba   : > { %v328_v48 = vpop.f32.mrf.mxu0 }
  0xbb   : > { %v329_v49 = vadd.f32 %v328_v48, %v251_v46  ;;  %v342_v50 = vpop.f32.mrf.mxu1 }
  0xbc   : > { %v343_v51 = vadd.f32 %v342_v50, %v251_v46 }
  0xbd   : > { %vm375_vm3 = vcmp.gt.f32.partialorder %v329_v49, 0.0  ;;  %v391_v52 = vmul.f32 %v385_v47, %v329_v49 }
  0xbe   : > { %vm376_vm4 = vcmp.gt.f32.partialorder %v343_v51, 0.0  ;;  %v392_v53 = vmul.f32 %v385_v47, %v343_v51 }
  0xbf   : > { %v399_v54 = vsel %vm375_vm3, %v329_v49, %v391_v52 }
  0xc0   : > { %407 = vst [vmem:[%s877_s12] sm:$0xff] %v399_v54  ;;  %v400_v55 = vsel %vm376_vm4, %v343_v51, %v392_v53 }
  0xc1   : > { %408 = vst [vmem:[%s877_s12 + $0x8] sm:$0xff] %v400_v55 }
  0xc2   : > { %v356_v57 = vpop.f32.mrf.mxu2  ;;  %v330_v60 = vpop.f32.mrf.mxu0 }
  0xc3   : > { %v357_v58 = vadd.f32 %v356_v57, %v251_v46  ;;  %v370_v59 = vpop.f32.mrf.mxu3  ;;  %v331_v62 = vadd.f32 %v330_v60, %v256_v56  ;;  %v344_v63 = vpop.f32.mrf.mxu1 }
  0xc4   : > { %v371_v61 = vadd.f32 %v370_v59, %v251_v46  ;;  %v345_v2 = vadd.f32 %v344_v63, %v256_v56 }
  0xc5   : > { %vm377_vm5 = vcmp.gt.f32.partialorder %v357_v58, 0.0  ;;  %v393_v0 = vmul.f32 %v385_v47, %v357_v58  ;;  %vm379_vm7 = vcmp.gt.f32.partialorder %v331_v62, 0.0  ;;  %v395_v4 = vmul.f32 %v389_v1, %v331_v62 }
  0xc6   : > { %vm378_vm6 = vcmp.gt.f32.partialorder %v371_v61, 0.0  ;;  %v394_v3 = vmul.f32 %v385_v47, %v371_v61  ;;  %vm380_vm8 = vcmp.gt.f32.partialorder %v345_v2, 0.0  ;;  %v396_v6 = vmul.f32 %v389_v1, %v345_v2 }
  0xc7   : > { %v401_v5 = vsel %vm377_vm5, %v357_v58, %v393_v0  ;;  %v403_v8 = vsel %vm379_vm7, %v331_v62, %v395_v4  ;;  %v437_v18 = vld [vmem:[%s877_s12] sm:$0xff] (%p815_p5) }
  0xc8   : > { %409 = vst [vmem:[%s877_s12 + $0x10] sm:$0xff] %v401_v5  ;;  %v402_v7 = vsel %vm378_vm6, %v371_v61, %v394_v3  ;;  %v404_v9 = vsel %vm380_vm8, %v345_v2, %v396_v6  ;;  %v439_v19 = vld [vmem:[%s877_s12 + $0x8] sm:$0xff] (%p815_p5) }
  0xc9   : > { %410 = vst [vmem:[%s877_s12 + $0x18] sm:$0xff] %v402_v7 }
  0xca   : > { %411 = vst [vmem:[%s877_s12 + $0x20] sm:$0x1f] %v403_v8  ;;  %v358_v10 = vpop.f32.mrf.mxu2 }
  0xcb   : > { %412 = vst [vmem:[%s877_s12 + $0x28] sm:$0x1f] %v404_v9  ;;  %v359_v11 = vadd.f32 %v358_v10, %v256_v56  ;;  %v372_v12 = vpop.f32.mrf.mxu3 }
  0xcc   : > { %v373_v13 = vadd.f32 %v372_v12, %v256_v56  ;;  %438 = vst [vmem:[%s424_s29] sm:$0xff] (%p815_p5), %v437_v18 }
  0xcd   : > { %vm381_vm9 = vcmp.gt.f32.partialorder %v359_v11, 0.0  ;;  %v397_v14 = vmul.f32 %v389_v1, %v359_v11  ;;  %421 = sbr.rel (!%p815_p5) target bundleno = 218 (0xda), region = 67  ;;  %440 = vst [vmem:[%s424_s29 + $0x8] sm:$0xff] (%p815_p5), %v439_v19 }
  0xce   : > { %vm382_vm10 = vcmp.gt.f32.partialorder %v373_v13, 0.0  ;;  %v398_v15 = vmul.f32 %v389_v1, %v373_v13 }
  0xcf   : > { %v405_v16 = vsel %vm381_vm9, %v359_v11, %v397_v14  ;;  %v441_v20 = vld [vmem:[%s877_s12 + $0x10] sm:$0xff] (%p815_p5) }
  0xd0   : > { %413 = vst [vmem:[%s877_s12 + $0x30] sm:$0x1f] %v405_v16  ;;  %v406_v17 = vsel %vm382_vm10, %v373_v13, %v398_v15  ;;  %v443_v21 = vld [vmem:[%s877_s12 + $0x18] sm:$0xff] (%p815_p5) }
  0xd1   : > { %414 = vst [vmem:[%s877_s12 + $0x38] sm:$0x1f] %v406_v17  ;;  %v445_v22 = vld [vmem:[%s877_s12 + $0x20] sm:$0xff] (%p815_p5) }
  0xd2   : > { %442 = vst [vmem:[%s424_s29 + $0x10] sm:$0xff] %v441_v20  ;;  %v447_v23 = vld [vmem:[%s877_s12 + $0x28] sm:$0xff] }
  0xd3   : > { %444 = vst [vmem:[%s424_s29 + $0x18] sm:$0xff] %v443_v21 }
  0xd4   : > { %446 = vst [vmem:[%s424_s29 + $0x80] sm:$0xff] %v445_v22 }
  0xd5   : > { %448 = vst [vmem:[%s424_s29 + $0x88] sm:$0xff] %v447_v23 }
  0xd7   : > { %v449_v24 = vld [vmem:[%s877_s12 + $0x30] sm:$0xff] }
  0xd8   : > { %v451_v25 = vld [vmem:[%s877_s12 + $0x38] sm:$0xff]  ;;  %450 = vst [vmem:[%s424_s29 + $0x90] sm:$0xff] %v449_v24 }
  0xd9   : > { %452 = vst [vmem:[%s424_s29 + $0x98] sm:$0xff] %v451_v25 }
  0xda PF: > { %p12_p13 = scmp.ge.s32.totalorder %s799_s16, 6   ;;  %s918_s12 = smov %s745_s13 }
  0xdb   : > { %s919_s13 = smov %s809_s19  ;;  %s920_s14 = smov %s799_s16 }
  0xdc   :  { %14 = sbr.rel (!%p12_p13) target bundleno = 3 (0x3), region = 122 }
  0xe1   :  { %468 = vsyncpa [#allocation3], 1 }
  0xe2   :  { %470 = vsyncpa [#allocation3 + $0x1], 1 }
  0xe3   :  { %471 = vsyncpa [#allocation6], 1 }

// kernel: _lambda_.73
= control target key start
LH: loop header
LB: loop body
LE: loop exit
PB: predicated region body
PF: predicated region fallthrough
CT: control target
= control target key end

     0   :  { %s527_s12 = smov 0   ;;  %s529_s13 = smov 0   ;;  %s585_s0 = inlined_call_operand.vmem [shape: bf16[8,64], index: 0, kind: input, shape index: {}]   ;;  %s586_s1 = inlined_call_operand.vmem [shape: bf16[64,512], index: 1, kind: input, shape index: {}]   ;;  %s587_s2 = inlined_call_operand.vmem [shape: f32[8,2], index: 2, kind: input, shape index: {}]   ;;  %s588_s3 = inlined_call_operand.vmem [shape: f32[8,512], index: 3, kind: output, shape index: {}]  }
   0x1   :  { %s531_s14 = smov 0  }
   0x2 LB: > { %s397_s15 = sadd.s32 4294967295, %s503_s14   ;;  %s544_s16 = sadd.s32 1, %s503_s14   ;;  %s503_s14 = sphi %s531_s14, %s591_s14   ;;  %s499_s13 = sphi %s529_s13, %s590_s13   ;;  %s495_s12 = sphi %s527_s12, %s589_s12  }
   0x3   : > { %s38_s17 = ssub.s32 %s503_s14, %s544_s16  ;;  %s41_s18 = sadd.s32 1, %s499_s13 }
   0x4   : > { %p39_p0 = scmp.eq.s32.totalorder %s38_s17, 0  ;;  %p48_p1 = scmp.ne.s32.totalorder %s499_s13, %s495_s12 }
   0x5   : > { %p49_p2 = scmp.eq.s32.totalorder %s503_s14, 0  ;;  %p400_p4 = scmp.ge.s32.totalorder %s503_s14, 2 }
   0x6   : > { %s553_s19 = scalar_select %p39_p0, %s499_s13, %s41_s18  }
   0x7   : > { %p50_p3 = por %p49_p2, %p48_p1  ;;  %127 = sbr.rel (%p400_p4) target bundleno = 24 (0x18), region = 24 }
   0xc   : > { %130 = sbr.rel (!%p50_p3) target bundleno = 24 (0x18), region = 28  ;;  %s132_s20 = sand.u32 (%p50_p3), 1, %s499_s13  }
   0xd   : > { %s444_s21 = sshll.u32 (%p50_p3), %s503_s14, 3  ;;  %s401_s22 = sshll.u32 (%p50_p3), %s132_s20, 6 }
   0xe   : > { %s137_s25 = scalar_lea.vmem (%p50_p3), %s586_s1, %s444_s21  ;;  %s134_s26 = scalar_lea.vmem (%p50_p3), [#allocation2], %s401_s22 }
   0xf   : > { %v180_v0 = vld [vmem:[%s137_s25] sm:$0xff] (%p50_p3)  ;;  %v182_v1 = vld [vmem:[%s137_s25 + $0x10] sm:$0xff] (%p50_p3) }
  0x10   : > { %v184_v2 = vld [vmem:[%s137_s25 + $0x20] sm:$0xff] (%p50_p3)  ;;  %181 = vst [vmem:[%s134_s26] sm:$0xff] (%p50_p3), %v180_v0  ;;  %v186_v3 = vld [vmem:[%s137_s25 + $0x30] sm:$0xff] (%p50_p3) }
  0x11   : > { %183 = vst [vmem:[%s134_s26 + $0x8] sm:$0xff] %v182_v1  ;;  %v188_v4 = vld [vmem:[%s137_s25 + $0x40] sm:$0xff]  ;;  %v190_v5 = vld [vmem:[%s137_s25 + $0x50] sm:$0xff] }
  0x12   : > { %185 = vst [vmem:[%s134_s26 + $0x10] sm:$0xff] %v184_v2  ;;  %v192_v6 = vld [vmem:[%s137_s25 + $0x60] sm:$0xff]  ;;  %v194_v7 = vld [vmem:[%s137_s25 + $0x70] sm:$0xff] }
  0x13   : > { %187 = vst [vmem:[%s134_s26 + $0x18] sm:$0xff] %v186_v3 }
  0x14   : > { %189 = vst [vmem:[%s134_s26 + $0x20] sm:$0xff] %v188_v4 }
  0x15   : > { %191 = vst [vmem:[%s134_s26 + $0x28] sm:$0xff] %v190_v5 }
  0x16   : > { %193 = vst [vmem:[%s134_s26 + $0x30] sm:$0xff] %v192_v6 }
  0x17   : > { %195 = vst [vmem:[%s134_s26 + $0x38] sm:$0xff] %v194_v7 }
  0x18 PF: > { %p404_p5 = scmp.ge.s32.totalorder %s503_s14, 1  ;;  %p200_p6 = scmp.lt.s32.totalorder %s503_s14, 3 }
  0x1a   : > { %p201_p7 = pnand %p404_p5, %p200_p6 }
  0x1b   : > { %s207_s27 = sand.u32 (!%p201_p7), 1, %s495_s12   ;;  %s406_s7 = sshll.u32 (!%p201_p7), %s397_s15, 1 }
  0x1c   : > { %204 = sbr.rel (%p201_p7) target bundleno = 186 (0xba), region = 66  ;;  %s405_s30 = sshll.u32 (!%p201_p7), %s207_s27, 6 }
  0x1d   : > { %s209_s4 = scalar_lea.vmem (!%p201_p7), [#allocation2], %s405_s30  ;;  %p232_p8 = scmp.lt.s32.totalorder (!%p201_p7), %s406_s7, 3 }
  0x21   : > { %v247_v8 = vld [vmem:[%s587_s2] sm:$0xff]  ;;  %v505_v9 = vmov 0   ;;  %v434_v10 = vld [vmem:[%s209_s4 + $0x30] sm:$0xf]  ;;  %v452_v11 = vld [vmem:[%s209_s4 + $0x34] sm:$0xf0] }
  0x22   : > { %479 = vset.pattern.permute.xlu0 %v505_v9  ;;  %v451_v12 = vld [vmem:[%s209_s4 + $0x34] sm:$0xf]  ;;  %v435_v13 = vor.u32 %v452_v11, %v434_v10  ;;  %v436_v14 = vld [vmem:[%s209_s4 + $0x38] sm:$0xf0]  ;;  %v426_v15 = vld [vmem:[%s209_s4 + $0x20] sm:$0xf] }
  0x23   : > { %250 = vperm.xlu0 %479, %v247_v8   ;;  %v450_v16 = vld [vmem:[%s209_s4 + $0x24] sm:$0xf0]  ;;  %v439_v17 = vor.u32 %v451_v12, %v436_v14  ;;  %v449_v18 = vld [vmem:[%s209_s4 + $0x24] sm:$0xf]  ;;  %v428_v19 = vld [vmem:[%s209_s4 + $0x28] sm:$0xf0] }
  0x24   : > { %301 = vmatpush.bf16.msra.mxu0 %v435_v13  ;;  %v427_v20 = vor.u32 %v450_v16, %v426_v15  ;;  %v431_v21 = vor.u32 %v449_v18, %v428_v19  ;;  %v418_v22 = vld [vmem:[%s209_s4 + $0x10] sm:$0xf]  ;;  %v448_v23 = vld [vmem:[%s209_s4 + $0x14] sm:$0xf0]  ;;  %v447_v24 = vld [vmem:[%s209_s4 + $0x14] sm:$0xf] }
  0x25   : > { %314 = vmatpush.bf16.msra.mxu1 %v439_v17  ;;  %v420_v25 = vld [vmem:[%s209_s4 + $0x18] sm:$0xf0]  ;;  %v419_v26 = vor.u32 %v448_v23, %v418_v22  ;;  %v506_v27 = vmov 1   ;;  %v410_v29 = vld [vmem:[%s209_s4] sm:$0xf]  ;;  %vm293_vm0 = vcmask 523264  }
  0x26   : > { %v423_v28 = vor.u32 %v447_v24, %v420_v25  ;;  %v446_v30 = vld [vmem:[%s209_s4 + $0x4] sm:$0xf0]  ;;  %v445_v31 = vld [vmem:[%s209_s4 + $0x4] sm:$0xf]  ;;  %v412_v32 = vld [vmem:[%s209_s4 + $0x8] sm:$0xf0] }
  0x27   : > { %v411_v33 = vor.u32 %v446_v30, %v410_v29  ;;  %v415_v34 = vor.u32 %v445_v31, %v412_v32  ;;  %v238_v35 = vld [vmem:[%s585_s0] sm:$0xf]  ;;  %s593_s7 = smov (!%p232_p8, %s406_s7), 3 }
  0x28   : > { %302 = vmatpush.bf16.msra.mxu0 %v427_v20  ;;  %s407_s8 = sshll.u32 %s593_s7, 3 }
  0x29   : > { %315 = vmatpush.bf16.msra.mxu1 %v431_v21  ;;  %s235_s11 = scalar_lea.vmem %s588_s3, %s407_s8 }
  0x2b   : > { %480 = vset.pattern.permute.xlu0 %v506_v27 }
  0x2c   : > { %326 = vperm.xlu0 %480, %v247_v8   ;;  %303 = vmatpush.bf16.msra.mxu0 %v419_v26 }
  0x2d   : > { %316 = vmatpush.bf16.msra.mxu1 %v423_v28 }
  0x30   : > { %304 = vmatpush.bf16.msra.mxu0 %v411_v33 }
  0x31   : > { %317 = vmatpush.bf16.msra.mxu1 %v415_v34 }
  0x33   : > { %440 = vmatmul.msk.bf16.vlgmr.msra.gmra.mxu0 %vm293_vm0, %v238_v35 }
  0x34   : > { %441 = vmatmul.msk.bf16.vlgmr.msra.gmra.mxu1 %vm293_vm0, %v238_v35 }
  0x95   : > { %v251_v36 = vpop.permute.xlu0 %250 }
  0x9e   : > { %v327_v38 = vpop.permute.xlu0 %326 }
  0xb0   : > { %v306_v37 = vpop.f32.mrf.mxu0 }
  0xb1   : > { %v307_v39 = vadd.f32 %v306_v37, %v251_v36  ;;  %v319_v40 = vpop.f32.mrf.mxu1 }
  0xb2   : > { %v320_v41 = vadd.f32 %v319_v40, %v251_v36 }
  0xb3   : > { %vm323_vm1 = vcmp.gt.f32.partialorder %v307_v39, 0.0  ;;  %v329_v42 = vmul.f32 %v327_v38, %v307_v39 }
  0xb4   : > { %vm324_vm2 = vcmp.gt.f32.partialorder %v320_v41, 0.0  ;;  %v330_v43 = vmul.f32 %v327_v38, %v320_v41 }
  0xb5   : > { %v331_v44 = vsel %vm323_vm1, %v307_v39, %v329_v42 }
  0xb6   : > { %v332_v45 = vsel %vm324_vm2, %v320_v41, %v330_v43  ;;  %333 = vst [vmem:[%s235_s11] sm:$0xff] %v331_v44 }
  0xb7   : > { %334 = vst [vmem:[%s235_s11 + $0x8] sm:$0xff] %v332_v45 }
  0xb8   : > { %v308_v46 = vpop.f32.mrf.mxu0 }
  0xb9   : > { %v321_v47 = vpop.f32.mrf.mxu1 }
  0xba PF: > { %p10_p9 = scmp.ge.s32.totalorder %s544_s16, 4   ;;  %s589_s12 = smov %s499_s13 }
  0xbb   : > { %s590_s13 = smov %s553_s19  ;;  %s591_s14 = smov %s544_s16 }
  0xbc   :  { %12 = sbr.rel (!%p10_p9) target bundleno = 2 (0x2), region = 105 }

// kernel: _lambda_.74
= control target key start
LH: loop header
LB: loop body
LE: loop exit
PB: predicated region body
PF: predicated region fallthrough
CT: control target
= control target key end

     0   :  { %s544_s12 = smov 0   ;;  %s546_s13 = smov 0   ;;  %s621_s0 = inlined_call_operand.vmem [shape: bf16[8,72], index: 0, kind: input, shape index: {}]   ;;  %s622_s1 = inlined_call_operand.vmem [shape: bf16[72,512], index: 1, kind: input, shape index: {}]   ;;  %s623_s2 = inlined_call_operand.vmem [shape: f32[8,2], index: 2, kind: input, shape index: {}]   ;;  %s624_s3 = inlined_call_operand.vmem [shape: f32[8,512], index: 3, kind: output, shape index: {}]  }
   0x1   :  { %s548_s14 = smov 0  }
   0x2 LB: > { %s414_s15 = sadd.s32 4294967295, %s520_s14   ;;  %s561_s16 = sadd.s32 1, %s520_s14   ;;  %s520_s14 = sphi %s548_s14, %s627_s14   ;;  %s516_s13 = sphi %s546_s13, %s626_s13   ;;  %s512_s12 = sphi %s544_s12, %s625_s12  }
   0x3   : > { %s38_s17 = ssub.s32 %s520_s14, %s561_s16  ;;  %s41_s18 = sadd.s32 1, %s516_s13 }
   0x4   : > { %p39_p0 = scmp.eq.s32.totalorder %s38_s17, 0  ;;  %p48_p1 = scmp.ne.s32.totalorder %s516_s13, %s512_s12 }
   0x5   : > { %p49_p2 = scmp.eq.s32.totalorder %s520_s14, 0  ;;  %p417_p4 = scmp.ge.s32.totalorder %s520_s14, 2 }
   0x6   : > { %s570_s19 = scalar_select %p39_p0, %s516_s13, %s41_s18  }
   0x7   : > { %p50_p3 = por %p49_p2, %p48_p1  ;;  %127 = sbr.rel (%p417_p4) target bundleno = 25 (0x19), region = 24 }
   0xc   : > { %130 = sbr.rel (!%p50_p3) target bundleno = 25 (0x19), region = 28  ;;  %s132_s20 = sand.u32 (%p50_p3), 1, %s516_s13  }
   0xd   : > { %s459_s21 = sshll.u32 (%p50_p3), %s520_s14, 3  ;;  %s468_s22 = smul.u32 (%p50_p3), 72, %s132_s20 }
   0xe   : > { %s137_s25 = scalar_lea.vmem (%p50_p3), %s622_s1, %s459_s21 }
   0xf   : > { %v182_v0 = vld [vmem:[%s137_s25] sm:$0xff] (%p50_p3)  ;;  %v184_v1 = vld [vmem:[%s137_s25 + $0x10] sm:$0xff] (%p50_p3)  ;;  %s134_s26 = scalar_lea.vmem (%p50_p3), [#allocation2], %s468_s22 }
  0x10   : > { %v186_v2 = vld [vmem:[%s137_s25 + $0x20] sm:$0xff] (%p50_p3)  ;;  %183 = vst [vmem:[%s134_s26] sm:$0xff] (%p50_p3), %v182_v0  ;;  %v188_v3 = vld [vmem:[%s137_s25 + $0x30] sm:$0xff] (%p50_p3) }
  0x11   : > { %185 = vst [vmem:[%s134_s26 + $0x8] sm:$0xff] %v184_v1  ;;  %v190_v4 = vld [vmem:[%s137_s25 + $0x40] sm:$0xff]  ;;  %v192_v5 = vld [vmem:[%s137_s25 + $0x50] sm:$0xff] }
  0x12   : > { %187 = vst [vmem:[%s134_s26 + $0x10] sm:$0xff] %v186_v2  ;;  %v194_v6 = vld [vmem:[%s137_s25 + $0x60] sm:$0xff]  ;;  %v196_v7 = vld [vmem:[%s137_s25 + $0x70] sm:$0xff] }
  0x13   : > { %189 = vst [vmem:[%s134_s26 + $0x18] sm:$0xff] %v188_v3  ;;  %v198_v8 = vld [vmem:[%s137_s25 + $0x80] sm:$0xff] }
  0x14   : > { %191 = vst [vmem:[%s134_s26 + $0x20] sm:$0xff] %v190_v4 }
  0x15   : > { %193 = vst [vmem:[%s134_s26 + $0x28] sm:$0xff] %v192_v5 }
  0x16   : > { %195 = vst [vmem:[%s134_s26 + $0x30] sm:$0xff] %v194_v6 }
  0x17   : > { %197 = vst [vmem:[%s134_s26 + $0x38] sm:$0xff] %v196_v7 }
  0x18   : > { %199 = vst [vmem:[%s134_s26 + $0x40] sm:$0xff] %v198_v8 }
  0x19 PF: > { %p420_p5 = scmp.ge.s32.totalorder %s520_s14, 1  ;;  %p204_p6 = scmp.lt.s32.totalorder %s520_s14, 3 }
  0x1b   : > { %p205_p7 = pnand %p420_p5, %p204_p6 }
  0x1c   : > { %s211_s27 = sand.u32 (!%p205_p7), 1, %s512_s12   ;;  %s421_s7 = sshll.u32 (!%p205_p7), %s414_s15, 1 }
  0x1d   : > { %208 = sbr.rel (%p205_p7) target bundleno = 195 (0xc3), region = 66  ;;  %p236_p8 = scmp.lt.s32.totalorder (!%p205_p7), %s421_s7, 3 }
  0x1e   : > { %s469_s28 = smul.u32 (!%p205_p7), 72, %s211_s27 }
  0x20   : > { %s584_s4 = scalar_lea.vmem (!%p205_p7), [#allocation2], %s469_s28 }
  0x22   : > { %v522_v9 = vmov 0   ;;  %v252_v10 = vld [vmem:[%s623_s2] sm:$0xff]  ;;  %vm307_vm0 = vcmask 1043456   ;;  %v449_v14 = vld [vmem:[%s584_s4 + $0x30] sm:$0xf]  ;;  %v523_v28 = vmov 1  }
  0x23   : > { %496 = vset.pattern.permute.xlu0 %v522_v9  ;;  %v251_v11 = vld [vmem:[%s584_s4 + $0x40] sm:$0xff]  ;;  %v467_v17 = vld [vmem:[%s584_s4 + $0x34] sm:$0xf0]  ;;  %v466_v18 = vld [vmem:[%s584_s4 + $0x34] sm:$0xf]  ;;  %vm303_vm1 = vcmask 588800  }
  0x24   : > { %255 = vperm.xlu0 %496, %v252_v10   ;;  %v283_v12 = vunpack.c.l.b16 %v251_v11  ;;  %v284_v13 = vunpack.c.h.b16 %v251_v11  ;;  %v451_v19 = vld [vmem:[%s584_s4 + $0x38] sm:$0xf0]  ;;  %v450_v22 = vor.u32 %v467_v17, %v449_v14  ;;  %v441_v24 = vld [vmem:[%s584_s4 + $0x20] sm:$0xf]  ;;  %v465_v25 = vld [vmem:[%s584_s4 + $0x24] sm:$0xf0] }
  0x25   : > { %v454_v23 = vor.u32 %v466_v18, %v451_v19  ;;  %v464_v26 = vld [vmem:[%s584_s4 + $0x24] sm:$0xf]  ;;  %v443_v27 = vld [vmem:[%s584_s4 + $0x28] sm:$0xf0]  ;;  %v442_v29 = vor.u32 %v465_v25, %v441_v24  ;;  %v433_v31 = vld [vmem:[%s584_s4 + $0x10] sm:$0xf] }
  0x26   : > { %v293_v15 = vpack.c.b16 %v283_v12, %v283_v12  ;;  %v294_v16 = vpack.c.b16 %v284_v13, %v284_v13  ;;  %v446_v30 = vor.u32 %v464_v26, %v443_v27  ;;  %v463_v32 = vld [vmem:[%s584_s4 + $0x14] sm:$0xf0]  ;;  %v462_v33 = vld [vmem:[%s584_s4 + $0x14] sm:$0xf]  ;;  %v435_v34 = vld [vmem:[%s584_s4 + $0x18] sm:$0xf0] }
  0x27   : > { %v434_v35 = vor.u32 %v463_v32, %v433_v31  ;;  %v438_v36 = vor.u32 %v462_v33, %v435_v34  ;;  %v425_v37 = vld [vmem:[%s584_s4] sm:$0xf]  ;;  %v461_v38 = vld [vmem:[%s584_s4 + $0x4] sm:$0xf0]  ;;  %v460_v39 = vld [vmem:[%s584_s4 + $0x4] sm:$0xf] }
  0x28   : > { %v309_v20 = vsel %vm307_vm0, %v293_v15, 0  ;;  %v312_v21 = vsel %vm307_vm0, %v294_v16, 0  ;;  %v427_v40 = vld [vmem:[%s584_s4 + $0x8] sm:$0xf0]  ;;  %v426_v41 = vor.u32 %v461_v38, %v425_v37  ;;  %v242_v43 = vld [vmem:[%s621_s0] sm:$0xf] }
  0x29   : > { %317 = vmatpush.bf16.msra.mxu0 %v309_v20  ;;  %330 = vmatpush.bf16.msra.mxu1 %v312_v21  ;;  %v430_v42 = vor.u32 %v460_v39, %v427_v40  ;;  %s629_s7 = smov (!%p236_p8, %s421_s7), 3 }
  0x2a   : > { %s422_s8 = sshll.u32 %s629_s7, 3 }
  0x2b   : > { %s239_s11 = scalar_lea.vmem %s624_s3, %s422_s8 }
  0x2c   : > { %497 = vset.pattern.permute.xlu0 %v523_v28 }
  0x2d   : > { %343 = vperm.xlu0 %497, %v252_v10   ;;  %318 = vmatpush.bf16.msra.mxu0 %v450_v22 }
  0x2e   : > { %331 = vmatpush.bf16.msra.mxu1 %v454_v23 }
  0x31   : > { %319 = vmatpush.bf16.msra.mxu0 %v442_v29 }
  0x32   : > { %332 = vmatpush.bf16.msra.mxu1 %v446_v30 }
  0x35   : > { %320 = vmatpush.bf16.msra.mxu0 %v434_v35 }
  0x36   : > { %333 = vmatpush.bf16.msra.mxu1 %v438_v36 }
  0x39   : > { %321 = vmatpush.bf16.msra.mxu0 %v426_v41 }
  0x3a   : > { %334 = vmatpush.bf16.msra.mxu1 %v430_v42 }
  0x3c   : > { %455 = vmatmul.msk.bf16.vlgmr.msra.gmra.mxu0 %vm303_vm1, %v242_v43 }
  0x3d   : > { %456 = vmatmul.msk.bf16.vlgmr.msra.gmra.mxu1 %vm303_vm1, %v242_v43 }
  0x96   : > { %v256_v44 = vpop.permute.xlu0 %255 }
  0x9f   : > { %v344_v45 = vpop.permute.xlu0 %343 }
  0xb9   : > { %v323_v46 = vpop.f32.mrf.mxu0 }
  0xba   : > { %v336_v47 = vpop.f32.mrf.mxu1  ;;  %v324_v48 = vadd.f32 %v323_v46, %v256_v44 }
  0xbb   : > { %v337_v49 = vadd.f32 %v336_v47, %v256_v44 }
  0xbc   : > { %vm340_vm2 = vcmp.gt.f32.partialorder %v324_v48, 0.0  ;;  %v346_v50 = vmul.f32 %v344_v45, %v324_v48 }
  0xbd   : > { %vm341_vm3 = vcmp.gt.f32.partialorder %v337_v49, 0.0  ;;  %v347_v51 = vmul.f32 %v344_v45, %v337_v49 }
  0xbe   : > { %v348_v52 = vsel %vm340_vm2, %v324_v48, %v346_v50 }
  0xbf   : > { %v349_v53 = vsel %vm341_vm3, %v337_v49, %v347_v51  ;;  %350 = vst [vmem:[%s239_s11] sm:$0xff] %v348_v52 }
  0xc0   : > { %351 = vst [vmem:[%s239_s11 + $0x8] sm:$0xff] %v349_v53 }
  0xc1   : > { %v325_v54 = vpop.f32.mrf.mxu0 }
  0xc2   : > { %v338_v55 = vpop.f32.mrf.mxu1 }
  0xc3 PF: > { %p10_p9 = scmp.ge.s32.totalorder %s561_s16, 4   ;;  %s625_s12 = smov %s516_s13 }
  0xc4   : > { %s626_s13 = smov %s570_s19  ;;  %s627_s14 = smov %s561_s16 }
  0xc5   :  { %12 = sbr.rel (!%p10_p9) target bundleno = 2 (0x2), region = 105 }

// kernel: _lambda_.75
= control target key start
LH: loop header
LB: loop body
LE: loop exit
PB: predicated region body
PF: predicated region fallthrough
CT: control target
= control target key end

     0   :  { %s645_s15 = smov 0   ;;  %s647_s16 = smov 0   ;;  %s759_s0 = inlined_call_operand.vmem [shape: bf16[32,8], index: 0, kind: input, shape index: {}]   ;;  %s760_s1 = inlined_call_operand.vmem [shape: bf16[8,512], index: 1, kind: input, shape index: {}]   ;;  %s761_s2 = inlined_call_operand.vmem [shape: f32[32,2], index: 2, kind: input, shape index: {}]   ;;  %s762_s3 = inlined_call_operand.vmem [shape: f32[32,512], index: 3, kind: input, shape index: {}]   ;;  %s763_s4 = inlined_call_operand.vmem [shape: f32[32,512], index: 4, kind: output, shape index: {}]  }
   0x1   :  { %s649_s17 = smov 0  }
   0x2 LB: > { %s661_s18 = sadd.s32 4294967295, %s616_s17   ;;  %s664_s19 = sadd.s32 1, %s616_s17   ;;  %s616_s17 = sphi %s649_s17, %s767_s17   ;;  %s612_s16 = sphi %s647_s16, %s766_s16   ;;  %s608_s15 = sphi %s645_s15, %s765_s15  }
   0x3   : > { %s86_s20 = ssub.s32 %s616_s17, %s664_s19  ;;  %s89_s21 = sadd.s32 1, %s612_s16 }
   0x4   : > { %p87_p0 = scmp.eq.s32.totalorder %s86_s20, 0  ;;  %p96_p1 = scmp.ne.s32.totalorder %s612_s16, %s608_s15 }
   0x5   : > { %p97_p2 = scmp.eq.s32.totalorder %s616_s17, 0  ;;  %p126_p3 = scmp.eq.s32.totalorder %s661_s18, 1 }
   0x6   : > { %s674_s22 = scalar_select %p87_p0, %s612_s16, %s89_s21  }
   0x7   : > { %p98_p4 = por %p97_p2, %p96_p1  ;;  %p676_p5 = por %p126_p3, %p96_p1 }
   0x8   : > { %p531_p6 = scmp.ge.s32.totalorder %s616_s17, 2 }
   0xa   : > { %154 = sbr.rel (%p531_p6) target bundleno = 27 (0x1b), region = 24 }
   0xf   : > { %166 = sbr.rel (!%p98_p4) target bundleno = 27 (0x1b), region = 32  ;;  %s168_s24 = sand.u32 (%p98_p4), 1, %s612_s16  }
  0x10   : > { %s557_s25 = sshll.u32 (%p98_p4), %s616_s17, 4  ;;  %s532_s26 = sshll.u32 (%p98_p4), %s168_s24, 6 }
  0x11   : > { %s173_s29 = scalar_lea.vmem (%p98_p4), %s762_s3, %s557_s25  ;;  %s170_s30 = scalar_lea.vmem (%p98_p4), [#allocation2], %s532_s26 }
  0x12   : > { %v186_v0 = vld [vmem:[%s173_s29] sm:$0xff] (%p98_p4)  ;;  %v188_v1 = vld [vmem:[%s173_s29 + $0x8] sm:$0xff] (%p98_p4) }
  0x13   : > { %v190_v2 = vld [vmem:[%s173_s29 + $0x20] sm:$0xff] (%p98_p4)  ;;  %187 = vst [vmem:[%s170_s30] sm:$0xff] (%p98_p4), %v186_v0  ;;  %v192_v3 = vld [vmem:[%s173_s29 + $0x28] sm:$0xff] (%p98_p4) }
  0x14   : > { %189 = vst [vmem:[%s170_s30 + $0x8] sm:$0xff] %v188_v1  ;;  %v194_v4 = vld [vmem:[%s173_s29 + $0x40] sm:$0xff]  ;;  %v196_v5 = vld [vmem:[%s173_s29 + $0x48] sm:$0xff] }
  0x15   : > { %191 = vst [vmem:[%s170_s30 + $0x10] sm:$0xff] %v190_v2  ;;  %v198_v6 = vld [vmem:[%s173_s29 + $0x60] sm:$0xff]  ;;  %v200_v7 = vld [vmem:[%s173_s29 + $0x68] sm:$0xff] }
  0x16   : > { %193 = vst [vmem:[%s170_s30 + $0x18] sm:$0xff] %v192_v3 }
  0x17   : > { %195 = vst [vmem:[%s170_s30 + $0x20] sm:$0xff] %v194_v4 }
  0x18   : > { %197 = vst [vmem:[%s170_s30 + $0x28] sm:$0xff] %v196_v5 }
  0x19   : > { %199 = vst [vmem:[%s170_s30 + $0x30] sm:$0xff] %v198_v6 }
  0x1a   : > { %201 = vst [vmem:[%s170_s30 + $0x38] sm:$0xff] %v200_v7 }
  0x1b PF: > { %p535_p7 = scmp.ge.s32.totalorder %s616_s17, 1  ;;  %p206_p8 = scmp.lt.s32.totalorder %s616_s17, 3 }
  0x1d   : > { %p207_p9 = pnand %p535_p7, %p206_p8 }
  0x1e   : > { %s538_s5 = sshll.u32 (!%p207_p9), %s661_s18, 1  ;;  %s213_s28 = sand.u32 (!%p207_p9), 1, %s608_s15  }
  0x1f   : > { %210 = sbr.rel (%p207_p9) target bundleno = 208 (0xd0), region = 55  ;;  %p243_p10 = scmp.lt.s32.totalorder (!%p207_p9), %s538_s5, 3 }
  0x20   : > { %s711_s29 = sshll.u32 (!%p207_p9), %s213_s28, 6 }
  0x21   : > { %s714_s30 = scalar_lea.vmem (!%p207_p9), [#allocation2], %s711_s29  ;;  %s720_s15 = scalar_lea.vmem (!%p207_p9), [#allocation3], %s711_s29 }
  0x24   : > { %v618_v8 = vmov 0   ;;  %v258_v9 = vld [vmem:[%s761_s2 + $0x10] sm:$0xff]  ;;  %v256_v10 = vld [vmem:[%s761_s2] sm:$0xff]  ;;  %s769_s5 = smov (!%p243_p10, %s538_s5), 3  ;;  %v619_v11 = vmov 1   ;;  %v259_v13 = vld [vmem:[%s761_s2 + $0x18] sm:$0xff] }
  0x25   : > { %590 = vset.pattern.permute.xlu1 %v618_v8  ;;  %589 = vset.pattern.permute.xlu0 %v618_v8  ;;  %s539_s10 = sshll.u32 %s769_s5, 2  ;;  %v257_v14 = vld [vmem:[%s761_s2 + $0x8] sm:$0xff]  ;;  %vm302_vm0 = vcmask 1043456   ;;  %v558_v21 = vld [vmem:[%s759_s0] sm:$0xff]  ;;  %vm295_vm1 = vcmask 64512   ;;  %v389_v58 = vld [vmem:[%s714_s30 + $0x10] sm:$0xff] }
  0x26   : > { %272 = vperm.xlu1 %590, %v258_v9   ;;  %262 = vperm.xlu0 %589, %v256_v10   ;;  %s246_s13 = scalar_lea.vmem %s760_s1, %s539_s10  ;;  %v559_v22 = vld [vmem:[%s759_s0 + $0x8] sm:$0xff]  ;;  %v387_v32 = vld [vmem:[%s714_s30] sm:$0xff]  ;;  %v390_v62 = vld [vmem:[%s714_s30 + $0x18] sm:$0xff]  ;;  %s560_s5 = sshll.u32 (%p676_p5), %s661_s18, 4 }
  0x27   : > { %591 = vset.pattern.permute.xlu2 %v619_v11  ;;  %v255_v12 = vld [vmem:[%s246_s13] sm:$0xff]  ;;  %v388_v34 = vld [vmem:[%s714_s30 + $0x8] sm:$0xff]  ;;  %s428_s8 = scalar_lea.vmem (%p676_p5), %s763_s4, %s560_s5 }
  0x28   : > { %356 = vperm.xlu2 %591, %v256_v10   ;;  %v291_v15 = vunpack.c.l.b16 %v255_v12  ;;  %v292_v16 = vunpack.c.h.b16 %v255_v12  ;;  %v391_v49 = vld [vmem:[%s714_s30 + $0x20] sm:$0xff]  ;;  %v392_v54 = vld [vmem:[%s714_s30 + $0x28] sm:$0xff] }
  0x2a   : > { %v293_v17 = vpack.c.b16 %v291_v15, %v291_v15  ;;  %v294_v18 = vpack.c.b16 %v292_v16, %v292_v16  ;;  %v394_v16 = vld [vmem:[%s714_s30 + $0x38] sm:$0xff] }
  0x2c   : > { %v304_v19 = vsel %vm302_vm0, %v293_v17, 0  ;;  %v307_v20 = vsel %vm302_vm0, %v294_v18, 0 }
  0x2d   : > { %316 = vmatpush.bf16.msra.mxu0 %v304_v19  ;;  %561 = vmatpush.bf16.msra.mxu2 %v304_v19 }
  0x2e   : > { %277 = vperm.xlu1 %590, %v259_v13   ;;  %267 = vperm.xlu0 %589, %v257_v14  }
  0x2f   : > { %335 = vmatpush.bf16.msra.mxu1 %v307_v20  ;;  %562 = vmatpush.bf16.msra.mxu3 %v307_v20 }
  0x30   : > { %360 = vperm.xlu2 %591, %v257_v14   ;;  %548 = vmatmul.msk.bf16.vlgmr.msra.gmra.mxu0 %vm295_vm1, %v558_v21  ;;  %v393_v14 = vld [vmem:[%s714_s30 + $0x30] sm:$0xff] }
  0x31   : > { %549 = vmatmul.msk.bf16.vlgmr.msra.gmra.mxu2 %vm295_vm1, %v559_v22 }
  0x32   : > { %550 = vmatmul.msk.bf16.vlgmr.msra.gmra.mxu1 %vm295_vm1, %v558_v21  ;;  %551 = vmatmul.msk.bf16.vlgmr.msra.gmra.mxu3 %vm295_vm1, %v559_v22 }
  0x36   : > { %592 = vset.pattern.permute.xlu0 %v619_v11  ;;  %593 = vset.pattern.permute.xlu1 %v619_v11 }
  0x37   : > { %364 = vperm.xlu0 %592, %v258_v9   ;;  %368 = vperm.xlu1 %593, %v259_v13  }
  0x82   : > { %v357_v26 = vpop.permute.xlu2 %356 }
  0x8a   : > { %v361_v52 = vpop.permute.xlu2 %360 }
  0x98   : > { %v263_v23 = vpop.permute.xlu0 %262  ;;  %v273_v24 = vpop.permute.xlu1 %272 }
  0xa0   : > { %v268_v25 = vpop.permute.xlu0 %267  ;;  %v278_v35 = vpop.permute.xlu1 %277 }
  0xa9   : > { %v365_v40 = vpop.permute.xlu0 %364  ;;  %v369_v5 = vpop.permute.xlu1 %368 }
  0xad   : > { %v318_v27 = vpop.f32.mrf.mxu0 }
  0xae   : > { %v319_v28 = vadd.f32 %v318_v27, %v263_v23 }
  0xaf   : > { %v337_v29 = vpop.f32.mrf.mxu1 }
  0xb0   : > { %v338_v30 = vadd.f32 %v337_v29, %v263_v23  ;;  %vm347_vm2 = vcmp.gt.f32.partialorder %v319_v28, 0.0  ;;  %v371_v31 = vmul.f32 %v357_v26, %v319_v28 }
  0xb2   : > { %vm348_vm3 = vcmp.gt.f32.partialorder %v338_v30, 0.0  ;;  %v372_v33 = vmul.f32 %v357_v26, %v338_v30  ;;  %v379_v36 = vsel %vm347_vm2, %v319_v28, %v371_v31 }
  0xb3   : > { %v395_v37 = vadd.f32 %v387_v32, %v379_v36 }
  0xb4   : > { %v380_v38 = vsel %vm348_vm3, %v338_v30, %v372_v33  ;;  %v323_v39 = vpop.f32.mrf.mxu2 }
  0xb5   : > { %v396_v41 = vadd.f32 %v388_v34, %v380_v38  ;;  %v324_v42 = vadd.f32 %v323_v39, %v273_v24  ;;  %v342_v43 = vpop.f32.mrf.mxu3  ;;  %v403_v44 = vmax.f32 %v395_v37, 0.0  ;;  %v320_v46 = vpop.f32.mrf.mxu0 }
  0xb6   : > { %v343_v45 = vadd.f32 %v342_v43, %v273_v24  ;;  %v321_v50 = vadd.f32 %v320_v46, %v268_v25 }
  0xb7   : > { %v404_v47 = vmax.f32 %v396_v41, 0.0  ;;  %vm351_vm4 = vcmp.gt.f32.partialorder %v324_v42, 0.0  ;;  %v375_v48 = vmul.f32 %v365_v40, %v324_v42  ;;  %v339_v51 = vpop.f32.mrf.mxu1  ;;  %411 = vst [vmem:[%s720_s15] sm:$0xff] %v403_v44 }
  0xb8   : > { %vm352_vm5 = vcmp.gt.f32.partialorder %v343_v45, 0.0  ;;  %v376_v53 = vmul.f32 %v365_v40, %v343_v45  ;;  %v340_v55 = vadd.f32 %v339_v51, %v268_v25  ;;  %vm349_vm6 = vcmp.gt.f32.partialorder %v321_v50, 0.0 }
  0xb9   : > { %412 = vst [vmem:[%s720_s15 + $0x8] sm:$0xff] %v404_v47  ;;  %v383_v56 = vsel %vm351_vm4, %v324_v42, %v375_v48  ;;  %v373_v57 = vmul.f32 %v361_v52, %v321_v50 }
  0xba   : > { %v384_v59 = vsel %vm352_vm5, %v343_v45, %v376_v53  ;;  %v399_v60 = vadd.f32 %v391_v49, %v383_v56  ;;  %vm350_vm7 = vcmp.gt.f32.partialorder %v340_v55, 0.0  ;;  %v374_v61 = vmul.f32 %v361_v52, %v340_v55 }
  0xbb   : > { %v400_v63 = vadd.f32 %v392_v54, %v384_v59  ;;  %v381_v0 = vsel %vm349_vm6, %v321_v50, %v373_v57 }
  0xbc   : > { %v407_v1 = vmax.f32 %v399_v60, 0.0  ;;  %v397_v2 = vadd.f32 %v389_v58, %v381_v0  ;;  %v382_v3 = vsel %vm350_vm7, %v340_v55, %v374_v61  ;;  %v325_v4 = vpop.f32.mrf.mxu2 }
  0xbd   : > { %v408_v6 = vmax.f32 %v400_v63, 0.0  ;;  %v398_v7 = vadd.f32 %v390_v62, %v382_v3  ;;  %v326_v8 = vadd.f32 %v325_v4, %v278_v35  ;;  %v344_v9 = vpop.f32.mrf.mxu3 }
  0xbe   : > { %415 = vst [vmem:[%s720_s15 + $0x20] sm:$0xff] %v407_v1  ;;  %v405_v10 = vmax.f32 %v397_v2, 0.0  ;;  %v345_v11 = vadd.f32 %v344_v9, %v278_v35  ;;  %v441_v23 = vld [vmem:[%s720_s15] sm:$0xff] (%p676_p5) }
  0xbf   : > { %416 = vst [vmem:[%s720_s15 + $0x28] sm:$0xff] %v408_v6  ;;  %v406_v12 = vmax.f32 %v398_v7, 0.0  ;;  %vm353_vm8 = vcmp.gt.f32.partialorder %v326_v8, 0.0  ;;  %v377_v13 = vmul.f32 %v369_v5, %v326_v8 }
  0xc0   : > { %413 = vst [vmem:[%s720_s15 + $0x10] sm:$0xff] %v405_v10  ;;  %vm354_vm9 = vcmp.gt.f32.partialorder %v345_v11, 0.0  ;;  %v378_v15 = vmul.f32 %v369_v5, %v345_v11  ;;  %v443_v24 = vld [vmem:[%s720_s15 + $0x8] sm:$0xff] (%p676_p5) }
  0xc1   : > { %414 = vst [vmem:[%s720_s15 + $0x18] sm:$0xff] %v406_v12  ;;  %v385_v17 = vsel %vm353_vm8, %v326_v8, %v377_v13 }
  0xc2   : > { %v386_v18 = vsel %vm354_vm9, %v345_v11, %v378_v15  ;;  %v401_v19 = vadd.f32 %v393_v14, %v385_v17  ;;  %442 = vst [vmem:[%s428_s8] sm:$0xff] (%p676_p5), %v441_v23 }
  0xc3   : > { %v402_v20 = vadd.f32 %v394_v16, %v386_v18  ;;  %425 = sbr.rel (!%p676_p5) target bundleno = 208 (0xd0), region = 63  ;;  %444 = vst [vmem:[%s428_s8 + $0x8] sm:$0xff] (%p676_p5), %v443_v24 }
  0xc4   : > { %v409_v21 = vmax.f32 %v401_v19, 0.0 }
  0xc5   : > { %v410_v22 = vmax.f32 %v402_v20, 0.0  ;;  %v449_v27 = vld [vmem:[%s720_s15 + $0x20] sm:$0xff] (%p676_p5) }
  0xc6   : > { %417 = vst [vmem:[%s720_s15 + $0x30] sm:$0xff] %v409_v21  ;;  %v451_v28 = vld [vmem:[%s720_s15 + $0x28] sm:$0xff] (%p676_p5) }
  0xc7   : > { %418 = vst [vmem:[%s720_s15 + $0x38] sm:$0xff] %v410_v22  ;;  %v445_v25 = vld [vmem:[%s720_s15 + $0x10] sm:$0xff] (%p676_p5) }
  0xc8   : > { %v447_v26 = vld [vmem:[%s720_s15 + $0x18] sm:$0xff]  ;;  %446 = vst [vmem:[%s428_s8 + $0x20] sm:$0xff] %v445_v25 }
  0xc9   : > { %448 = vst [vmem:[%s428_s8 + $0x28] sm:$0xff] %v447_v26 }
  0xca   : > { %450 = vst [vmem:[%s428_s8 + $0x40] sm:$0xff] %v449_v27 }
  0xcb   : > { %452 = vst [vmem:[%s428_s8 + $0x48] sm:$0xff] %v451_v28 }
  0xcd   : > { %v453_v29 = vld [vmem:[%s720_s15 + $0x30] sm:$0xff] }
  0xce   : > { %v455_v30 = vld [vmem:[%s720_s15 + $0x38] sm:$0xff]  ;;  %454 = vst [vmem:[%s428_s8 + $0x60] sm:$0xff] %v453_v29 }
  0xcf   : > { %456 = vst [vmem:[%s428_s8 + $0x68] sm:$0xff] %v455_v30 }
  0xd0 PF: > { %p11_p11 = scmp.ge.s32.totalorder %s664_s19, 4   ;;  %s765_s15 = smov %s612_s16 }
  0xd1   : > { %s766_s16 = smov %s674_s22  ;;  %s767_s17 = smov %s664_s19 }
  0xd2   :  { %13 = sbr.rel (!%p11_p11) target bundleno = 2 (0x2), region = 120 }

// kernel: _lambda_.76
= control target key start
LH: loop header
LB: loop body
LE: loop exit
PB: predicated region body
PF: predicated region fallthrough
CT: control target
= control target key end

     0   :  { %s467_s12 = smov 0   ;;  %s469_s13 = smov 0   ;;  %s525_s0 = inlined_call_operand.vmem [shape: bf16[8,32], index: 0, kind: input, shape index: {}]   ;;  %s526_s1 = inlined_call_operand.vmem [shape: bf16[32,512], index: 1, kind: input, shape index: {}]   ;;  %s527_s2 = inlined_call_operand.vmem [shape: f32[8,2], index: 2, kind: input, shape index: {}]   ;;  %s528_s3 = inlined_call_operand.vmem [shape: f32[8,512], index: 3, kind: output, shape index: {}]  }
   0x1   :  { %s471_s14 = smov 0  }
   0x2 LB: > { %s357_s15 = sadd.s32 4294967295, %s443_s14   ;;  %s484_s16 = sadd.s32 1, %s443_s14   ;;  %s443_s14 = sphi %s471_s14, %s531_s14   ;;  %s439_s13 = sphi %s469_s13, %s530_s13   ;;  %s435_s12 = sphi %s467_s12, %s529_s12  }
   0x3   : > { %s38_s17 = ssub.s32 %s443_s14, %s484_s16  ;;  %s41_s18 = sadd.s32 1, %s439_s13 }
   0x4   : > { %p39_p0 = scmp.eq.s32.totalorder %s38_s17, 0  ;;  %p48_p1 = scmp.ne.s32.totalorder %s439_s13, %s435_s12 }
   0x5   : > { %p49_p2 = scmp.eq.s32.totalorder %s443_s14, 0  ;;  %p360_p4 = scmp.ge.s32.totalorder %s443_s14, 2 }
   0x6   : > { %s493_s19 = scalar_select %p39_p0, %s439_s13, %s41_s18  }
   0x7   : > { %p50_p3 = por %p49_p2, %p48_p1  ;;  %127 = sbr.rel (%p360_p4) target bundleno = 20 (0x14), region = 24 }
   0xc   : > { %130 = sbr.rel (!%p50_p3) target bundleno = 20 (0x14), region = 28  ;;  %s132_s20 = sand.u32 (%p50_p3), 1, %s439_s13  }
   0xd   : > { %s388_s21 = sshll.u32 (%p50_p3), %s443_s14, 3  ;;  %s361_s22 = sshll.u32 (%p50_p3), %s132_s20, 5 }
   0xe   : > { %s137_s25 = scalar_lea.vmem (%p50_p3), %s526_s1, %s388_s21  ;;  %s134_s26 = scalar_lea.vmem (%p50_p3), [#allocation2], %s361_s22 }
   0xf   : > { %v172_v0 = vld [vmem:[%s137_s25] sm:$0xff] (%p50_p3)  ;;  %v174_v1 = vld [vmem:[%s137_s25 + $0x10] sm:$0xff] (%p50_p3) }
  0x10   : > { %v176_v2 = vld [vmem:[%s137_s25 + $0x20] sm:$0xff] (%p50_p3)  ;;  %173 = vst [vmem:[%s134_s26] sm:$0xff] (%p50_p3), %v172_v0  ;;  %v178_v3 = vld [vmem:[%s137_s25 + $0x30] sm:$0xff] (%p50_p3) }
  0x11   : > { %175 = vst [vmem:[%s134_s26 + $0x8] sm:$0xff] %v174_v1 }
  0x12   : > { %177 = vst [vmem:[%s134_s26 + $0x10] sm:$0xff] %v176_v2 }
  0x13   : > { %179 = vst [vmem:[%s134_s26 + $0x18] sm:$0xff] %v178_v3 }
  0x14 PF: > { %p364_p5 = scmp.ge.s32.totalorder %s443_s14, 1  ;;  %p184_p6 = scmp.lt.s32.totalorder %s443_s14, 3 }
  0x16   : > { %p185_p7 = pnand %p364_p5, %p184_p6 }
  0x17   : > { %s191_s27 = sand.u32 (!%p185_p7), 1, %s435_s12   ;;  %s366_s7 = sshll.u32 (!%p185_p7), %s357_s15, 1 }
  0x18   : > { %188 = sbr.rel (%p185_p7) target bundleno = 174 (0xae), region = 66  ;;  %s365_s30 = sshll.u32 (!%p185_p7), %s191_s27, 5 }
  0x19   : > { %s193_s4 = scalar_lea.vmem (!%p185_p7), [#allocation2], %s365_s30  ;;  %p216_p8 = scmp.lt.s32.totalorder (!%p185_p7), %s366_s7, 3 }
  0x1d   : > { %v227_v4 = vld [vmem:[%s527_s2] sm:$0xff]  ;;  %v445_v5 = vmov 0   ;;  %v378_v6 = vld [vmem:[%s193_s4 + $0x10] sm:$0xf]  ;;  %v392_v7 = vld [vmem:[%s193_s4 + $0x14] sm:$0xf0] }
  0x1e   : > { %419 = vset.pattern.permute.xlu0 %v445_v5  ;;  %v391_v8 = vld [vmem:[%s193_s4 + $0x14] sm:$0xf]  ;;  %v379_v9 = vor.u32 %v392_v7, %v378_v6  ;;  %v380_v10 = vld [vmem:[%s193_s4 + $0x18] sm:$0xf0]  ;;  %v370_v11 = vld [vmem:[%s193_s4] sm:$0xf] }
  0x1f   : > { %230 = vperm.xlu0 %419, %v227_v4   ;;  %v390_v12 = vld [vmem:[%s193_s4 + $0x4] sm:$0xf0]  ;;  %v383_v13 = vor.u32 %v391_v8, %v380_v10  ;;  %v389_v14 = vld [vmem:[%s193_s4 + $0x4] sm:$0xf]  ;;  %v372_v15 = vld [vmem:[%s193_s4 + $0x8] sm:$0xf0] }
  0x20   : > { %263 = vmatpush.bf16.msra.mxu0 %v379_v9  ;;  %v371_v16 = vor.u32 %v390_v12, %v370_v11  ;;  %v375_v17 = vor.u32 %v389_v14, %v372_v15  ;;  %v222_v18 = vld [vmem:[%s525_s0] sm:$0xf]  ;;  %vm253_vm0 = vcmask 261120   ;;  %v446_v19 = vmov 1   ;;  %s533_s7 = smov (!%p216_p8, %s366_s7), 3 }
  0x21   : > { %276 = vmatpush.bf16.msra.mxu1 %v383_v13  ;;  %s367_s8 = sshll.u32 %s533_s7, 3 }
  0x22   : > { %s219_s11 = scalar_lea.vmem %s528_s3, %s367_s8 }
  0x24   : > { %264 = vmatpush.bf16.msra.mxu0 %v371_v16 }
  0x25   : > { %277 = vmatpush.bf16.msra.mxu1 %v375_v17 }
  0x27   : > { %420 = vset.pattern.permute.xlu0 %v446_v19  ;;  %384 = vmatmul.msk.bf16.vlgmr.msra.gmra.mxu0 %vm253_vm0, %v222_v18 }
  0x28   : > { %286 = vperm.xlu0 %420, %v227_v4   ;;  %385 = vmatmul.msk.bf16.vlgmr.msra.gmra.mxu1 %vm253_vm0, %v222_v18 }
  0x91   : > { %v231_v20 = vpop.permute.xlu0 %230 }
  0x9a   : > { %v287_v22 = vpop.permute.xlu0 %286 }
  0xa4   : > { %v266_v21 = vpop.f32.mrf.mxu0 }
  0xa5   : > { %v267_v23 = vadd.f32 %v266_v21, %v231_v20  ;;  %v279_v24 = vpop.f32.mrf.mxu1 }
  0xa6   : > { %v280_v25 = vadd.f32 %v279_v24, %v231_v20 }
  0xa7   : > { %vm283_vm1 = vcmp.gt.f32.partialorder %v267_v23, 0.0  ;;  %v289_v26 = vmul.f32 %v287_v22, %v267_v23 }
  0xa8   : > { %vm284_vm2 = vcmp.gt.f32.partialorder %v280_v25, 0.0  ;;  %v290_v27 = vmul.f32 %v287_v22, %v280_v25 }
  0xa9   : > { %v291_v28 = vsel %vm283_vm1, %v267_v23, %v289_v26 }
  0xaa   : > { %v292_v29 = vsel %vm284_vm2, %v280_v25, %v290_v27  ;;  %293 = vst [vmem:[%s219_s11] sm:$0xff] %v291_v28 }
  0xab   : > { %294 = vst [vmem:[%s219_s11 + $0x8] sm:$0xff] %v292_v29 }
  0xac   : > { %v268_v30 = vpop.f32.mrf.mxu0 }
  0xad   : > { %v281_v31 = vpop.f32.mrf.mxu1 }
  0xae PF: > { %p10_p9 = scmp.ge.s32.totalorder %s484_s16, 4   ;;  %s529_s12 = smov %s439_s13 }
  0xaf   : > { %s530_s13 = smov %s493_s19  ;;  %s531_s14 = smov %s484_s16 }
  0xb0   :  { %12 = sbr.rel (!%p10_p9) target bundleno = 2 (0x2), region = 105 }

// kernel: _lambda_.88
= control target key start
LH: loop header
LB: loop body
LE: loop exit
PB: predicated region body
PF: predicated region fallthrough
CT: control target
= control target key end

     0   :  { %v182_v2 = vmov 0   ;;  %v183_v4 = vmov 1   ;;  %s243_s1 = inlined_call_operand.vmem [shape: bf16[128,128], index: 1, kind: input, shape index: {}]   ;;  %s244_s2 = inlined_call_operand.vmem [shape: f32[16,2], index: 2, kind: input, shape index: {}]   ;;  %s245_s0 = inlined_call_operand.vmem [shape: bf16[16,128], index: 0, kind: input, shape index: {}]   ;;  %s246_s3 = inlined_call_operand.vmem [shape: f32[16,128], index: 3, kind: output, shape index: {}]  }
   0x1   :  { %v176_v0 = vld [vmem:[%s243_s1 + $0x38] sm:$0xff]  ;;  %v175_v1 = vld [vmem:[%s243_s1 + $0x30] sm:$0xff]  ;;  %179 = vset.pattern.permute.xlu0 %v182_v2  ;;  %v32_v3 = vld [vmem:[%s244_s2] sm:$0xff]  ;;  %180 = vset.pattern.permute.xlu1 %v183_v4 }
   0x2   :  { %98 = vmatpush.bf16.msra.mxu0 %v176_v0  ;;  %36 = vperm.xlu0 %179, %v32_v3   ;;  %v174_v5 = vld [vmem:[%s243_s1 + $0x28] sm:$0xff]  ;;  %v173_v7 = vld [vmem:[%s243_s1 + $0x20] sm:$0xff]  ;;  %v172_v8 = vld [vmem:[%s243_s1 + $0x18] sm:$0xff] }
   0x3   :  { %115 = vperm.xlu1 %180, %v32_v3   ;;  %v33_v6 = vld [vmem:[%s244_s2 + $0x8] sm:$0xff]  ;;  %v171_v9 = vld [vmem:[%s243_s1 + $0x10] sm:$0xff]  ;;  %v169_v11 = vld [vmem:[%s243_s1] sm:$0xff] }
   0x4   :  { %v170_v10 = vld [vmem:[%s243_s1 + $0x8] sm:$0xff]  ;;  %v168_v12 = vld [vmem:[%s245_s0] sm:$0xff] }
   0x6   :  { %99 = vmatpush.bf16.msra.mxu0 %v175_v1 }
   0xa   :  { %100 = vmatpush.bf16.msra.mxu0 %v174_v5  ;;  %41 = vperm.xlu0 %179, %v33_v6  }
   0xb   :  { %119 = vperm.xlu1 %180, %v33_v6  }
   0xe   :  { %101 = vmatpush.bf16.msra.mxu0 %v173_v7 }
  0x12   :  { %102 = vmatpush.bf16.msra.mxu0 %v172_v8  ;;  %181 = vset.pattern.permute.xlu0 %v183_v4 }
  0x16   :  { %103 = vmatpush.bf16.msra.mxu0 %v171_v9 }
  0x1a   :  { %104 = vmatpush.bf16.msra.mxu0 %v170_v10 }
  0x1e   :  { %105 = vmatpush.bf16.msra.mxu0 %v169_v11 }
  0x21   :  { %106 = vmatmul.bf16.vlgmr.msra.gmra.mxu0 %v168_v12 }
  0x74   :  { %v37_v13 = vpop.permute.xlu0 %36 }
  0x75   :  { %v116_v14 = vpop.permute.xlu1 %115 }
  0x7c   :  { %v42_v19 = vpop.permute.xlu0 %41 }
  0x7d   :  { %v120_v22 = vpop.permute.xlu1 %119 }
  0x9e   :  { %v107_v15 = vpop.f32.mrf.mxu0 }
  0x9f   :  { %v108_v16 = vadd.f32 %v107_v15, %v37_v13 }
  0xa1   :  { %vm112_vm0 = vcmp.gt.f32.partialorder %v108_v16, 0.0  ;;  %v122_v17 = vmul.f32 %v116_v14, %v108_v16 }
  0xa3   :  { %v124_v18 = vsel %vm112_vm0, %v108_v16, %v122_v17 }
  0xa4   :  { %126 = vst [vmem:[%s246_s3] sm:$0xff] %v124_v18 }
  0xa6   :  { %v109_v20 = vpop.f32.mrf.mxu0 }
  0xa7   :  { %v110_v21 = vadd.f32 %v109_v20, %v42_v19 }
  0xa9   :  { %vm113_vm1 = vcmp.gt.f32.partialorder %v110_v21, 0.0  ;;  %v123_v23 = vmul.f32 %v120_v22, %v110_v21 }
  0xab   :  { %v125_v24 = vsel %vm113_vm1, %v110_v21, %v123_v23 }
  0xac   :  { %127 = vst [vmem:[%s246_s3 + $0x8] sm:$0xff] %v125_v24 }

// kernel: _lambda_.89
= control target key start
LH: loop header
LB: loop body
LE: loop exit
PB: predicated region body
PF: predicated region fallthrough
CT: control target
= control target key end

     0   :  { %v223_v4 = vmov 0   ;;  %v224_v6 = vmov 1   ;;  %vm110_vm0 = vcmask 130048   ;;  %s296_s1 = inlined_call_operand.vmem [shape: bf16[144,128], index: 1, kind: input, shape index: {}]   ;;  %s297_s0 = inlined_call_operand.vmem [shape: bf16[16,144], index: 0, kind: input, shape index: {}]   ;;  %s298_s2 = inlined_call_operand.vmem [shape: f32[16,2], index: 2, kind: input, shape index: {}]   ;;  %s299_s3 = inlined_call_operand.vmem [shape: f32[16,128], index: 3, kind: output, shape index: {}]  }
   0x1   :  { %v216_v0 = vld [vmem:[%s296_s1 + $0x38] sm:$0xff]  ;;  %v215_v1 = vld [vmem:[%s296_s1 + $0x30] sm:$0xff]  ;;  %v217_v2 = vld [vmem:[%s296_s1 + $0x40] sm:$0xff]  ;;  %220 = vset.pattern.permute.xlu0 %v223_v4  ;;  %221 = vset.pattern.permute.xlu1 %v224_v6 }
   0x2   :  { %114 = vmatpush.bf16.msra.mxu0 %v216_v0  ;;  %v207_v3 = vld [vmem:[%s297_s0 + $0x4] sm:$0xf]  ;;  %v166_v5 = vld [vmem:[%s297_s0 + $0x8] sm:$0xf0]  ;;  %135 = vmatpush.bf16.msra.mxu1 %v217_v2  ;;  %v212_v12 = vld [vmem:[%s296_s1 + $0x18] sm:$0xff] }
   0x3   :  { %v169_v7 = vor.u32 %v207_v3, %v166_v5  ;;  %v35_v8 = vld [vmem:[%s298_s2] sm:$0xff]  ;;  %v214_v9 = vld [vmem:[%s296_s1 + $0x28] sm:$0xff]  ;;  %v211_v13 = vld [vmem:[%s296_s1 + $0x10] sm:$0xff] }
   0x4   :  { %39 = vperm.xlu0 %220, %v35_v8   ;;  %145 = vperm.xlu1 %221, %v35_v8   ;;  %v213_v10 = vld [vmem:[%s296_s1 + $0x20] sm:$0xff]  ;;  %v36_v11 = vld [vmem:[%s298_s2 + $0x8] sm:$0xff] }
   0x5   :  { %206 = vmatmul.msk.bf16.vlgmr.msra.gmra.mxu1 %vm110_vm0, %v169_v7  ;;  %v210_v14 = vld [vmem:[%s296_s1 + $0x8] sm:$0xff]  ;;  %v209_v15 = vld [vmem:[%s296_s1] sm:$0xff] }
   0x6   :  { %115 = vmatpush.bf16.msra.mxu0 %v215_v1  ;;  %v164_v16 = vld [vmem:[%s297_s0] sm:$0xf]  ;;  %v208_v17 = vld [vmem:[%s297_s0 + $0x4] sm:$0xf0] }
   0x7   :  { %v165_v18 = vor.u32 %v208_v17, %v164_v16 }
   0xa   :  { %116 = vmatpush.bf16.msra.mxu0 %v214_v9 }
   0xc   :  { %44 = vperm.xlu0 %220, %v36_v11   ;;  %149 = vperm.xlu1 %221, %v36_v11  }
   0xe   :  { %117 = vmatpush.bf16.msra.mxu0 %v213_v10 }
  0x12   :  { %118 = vmatpush.bf16.msra.mxu0 %v212_v12 }
  0x14   :  { %222 = vset.pattern.permute.xlu0 %v224_v6 }
  0x16   :  { %119 = vmatpush.bf16.msra.mxu0 %v211_v13 }
  0x1a   :  { %120 = vmatpush.bf16.msra.mxu0 %v210_v14 }
  0x1e   :  { %121 = vmatpush.bf16.msra.mxu0 %v209_v15 }
  0x21   :  { %122 = vmatmul.bf16.vlgmr.msra.gmra.mxu0 %v165_v18 }
  0x76   :  { %v40_v19 = vpop.permute.xlu0 %39  ;;  %v146_v23 = vpop.permute.xlu1 %145 }
  0x7e   :  { %v45_v27 = vpop.permute.xlu0 %44  ;;  %v150_v32 = vpop.permute.xlu1 %149 }
  0x82   :  { %v137_v20 = vpop.f32.mrf.mxu1 }
  0x8a   :  { %v139_v30 = vpop.f32.mrf.mxu1 }
  0x9e   :  { %v123_v21 = vpop.f32.mrf.mxu0 }
  0x9f   :  { %v124_v22 = vadd.f32 %v123_v21, %v40_v19 }
  0xa1   :  { %v138_v24 = vadd.f32 %v137_v20, %v124_v22 }
  0xa3   :  { %vm142_vm1 = vcmp.gt.f32.partialorder %v138_v24, 0.0  ;;  %v152_v25 = vmul.f32 %v146_v23, %v138_v24 }
  0xa5   :  { %v154_v26 = vsel %vm142_vm1, %v138_v24, %v152_v25 }
  0xa6   :  { %156 = vst [vmem:[%s299_s3] sm:$0xff] %v154_v26  ;;  %v125_v28 = vpop.f32.mrf.mxu0 }
  0xa7   :  { %v126_v29 = vadd.f32 %v125_v28, %v45_v27 }
  0xa9   :  { %v140_v31 = vadd.f32 %v139_v30, %v126_v29 }
  0xab   :  { %vm143_vm2 = vcmp.gt.f32.partialorder %v140_v31, 0.0  ;;  %v153_v33 = vmul.f32 %v150_v32, %v140_v31 }
  0xad   :  { %v155_v34 = vsel %vm143_vm2, %v140_v31, %v153_v33 }
  0xae   :  { %157 = vst [vmem:[%s299_s3 + $0x8] sm:$0xff] %v155_v34 }

// kernel: _lambda_.90
= control target key start
LH: loop header
LB: loop body
LE: loop exit
PB: predicated region body
PF: predicated region fallthrough
CT: control target
= control target key end

     0   :  { %v276_v0 = vmov 0   ;;  %vm102_vm0 = vcmask 130048   ;;  %v277_v14 = vmov 1   ;;  %s393_s2 = inlined_call_operand.vmem [shape: f32[64,2], index: 2, kind: input, shape index: {}]   ;;  %s394_s1 = inlined_call_operand.vmem [shape: bf16[16,128], index: 1, kind: input, shape index: {}]   ;;  %s395_s0 = inlined_call_operand.vmem [shape: bf16[64,16], index: 0, kind: input, shape index: {}]   ;;  %s396_s3 = inlined_call_operand.vmem [shape: f32[64,128], index: 3, kind: input, shape index: {}]   ;;  %s397_s4 = inlined_call_operand.vmem [shape: f32[64,128], index: 4, kind: output, shape index: {}]  }
   0x1   :  { %271 = vset.pattern.permute.xlu1 %v276_v0  ;;  %270 = vset.pattern.permute.xlu0 %v276_v0  ;;  %v30_v1 = vld [vmem:[%s393_s2 + $0x10] sm:$0xff]  ;;  %v28_v2 = vld [vmem:[%s393_s2] sm:$0xff]  ;;  %v261_v5 = vld [vmem:[%s395_s0 + $0x8] sm:$0xff] }
   0x2   :  { %v264_v3 = vld [vmem:[%s394_s1] sm:$0xff]  ;;  %48 = vperm.xlu1 %271, %v30_v1   ;;  %38 = vperm.xlu0 %270, %v28_v2   ;;  %v262_v6 = vld [vmem:[%s395_s0 + $0x10] sm:$0xff]  ;;  %v263_v7 = vld [vmem:[%s395_s0 + $0x18] sm:$0xff] }
   0x3   :  { %v260_v4 = vld [vmem:[%s395_s0] sm:$0xff]  ;;  %122 = vmatpush.bf16.msra.mxu0 %v264_v3  ;;  %265 = vmatpush.bf16.msra.mxu1 %v264_v3  ;;  %v31_v9 = vld [vmem:[%s393_s2 + $0x18] sm:$0xff]  ;;  %v29_v10 = vld [vmem:[%s393_s2 + $0x8] sm:$0xff] }
   0x4   :  { %266 = vmatpush.bf16.msra.mxu2 %v264_v3  ;;  %267 = vmatpush.bf16.msra.mxu3 %v264_v3  ;;  %v32_v8 = vld [vmem:[%s393_s2 + $0x20] sm:$0xff]  ;;  %v33_v11 = vld [vmem:[%s393_s2 + $0x28] sm:$0xff]  ;;  %v35_v12 = vld [vmem:[%s393_s2 + $0x38] sm:$0xff] }
   0x5   :  { %272 = vset.pattern.permute.xlu2 %v276_v0  ;;  %v34_v13 = vld [vmem:[%s393_s2 + $0x30] sm:$0xff]  ;;  %v200_v28 = vld [vmem:[%s396_s3] sm:$0xff]  ;;  %v203_v43 = vld [vmem:[%s396_s3 + $0x18] sm:$0xff] }
   0x6   :  { %256 = vmatmul.msk.bf16.vlgmr.msra.gmra.mxu0 %vm102_vm0, %v260_v4  ;;  %257 = vmatmul.msk.bf16.vlgmr.msra.gmra.mxu1 %vm102_vm0, %v261_v5  ;;  %v202_v44 = vld [vmem:[%s396_s3 + $0x10] sm:$0xff]  ;;  %v201_v46 = vld [vmem:[%s396_s3 + $0x8] sm:$0xff] }
   0x7   :  { %258 = vmatmul.msk.bf16.vlgmr.msra.gmra.mxu2 %vm102_vm0, %v262_v6  ;;  %259 = vmatmul.msk.bf16.vlgmr.msra.gmra.mxu3 %vm102_vm0, %v263_v7  ;;  %v205_v63 = vld [vmem:[%s396_s3 + $0x28] sm:$0xff]  ;;  %v206_v4 = vld [vmem:[%s396_s3 + $0x30] sm:$0xff] }
   0x8   :  { %58 = vperm.xlu2 %272, %v32_v8  }
   0xa   :  { %53 = vperm.xlu1 %271, %v31_v9   ;;  %43 = vperm.xlu0 %270, %v29_v10  }
  0x10   :  { %63 = vperm.xlu2 %272, %v33_v11  }
  0x12   :  { %73 = vperm.xlu1 %271, %v35_v12   ;;  %68 = vperm.xlu0 %270, %v34_v13  }
  0x18   :  { %273 = vset.pattern.permute.xlu2 %v277_v14 }
  0x19   :  { %153 = vperm.xlu2 %273, %v28_v2   ;;  %v204_v2 = vld [vmem:[%s396_s3 + $0x20] sm:$0xff] }
  0x1a   :  { %275 = vset.pattern.permute.xlu1 %v277_v14  ;;  %274 = vset.pattern.permute.xlu0 %v277_v14 }
  0x1b   :  { %161 = vperm.xlu1 %275, %v30_v1   ;;  %157 = vperm.xlu0 %274, %v29_v10  }
  0x21   :  { %165 = vperm.xlu2 %273, %v31_v9  }
  0x23   :  { %169 = vperm.xlu1 %275, %v32_v8   ;;  %177 = vperm.xlu0 %274, %v34_v13  }
  0x29   :  { %173 = vperm.xlu2 %273, %v33_v11  }
  0x2b   :  { %181 = vperm.xlu1 %275, %v35_v12  }
  0x62   :  { %v59_v15 = vpop.permute.xlu2 %58 }
  0x6a   :  { %v64_v18 = vpop.permute.xlu2 %63 }
  0x73   :  { %v154_v21 = vpop.permute.xlu2 %153 }
  0x74   :  { %v49_v16 = vpop.permute.xlu1 %48  ;;  %v39_v17 = vpop.permute.xlu0 %38 }
  0x7b   :  { %v166_v31 = vpop.permute.xlu2 %165 }
  0x7c   :  { %v54_v19 = vpop.permute.xlu1 %53  ;;  %v44_v20 = vpop.permute.xlu0 %43 }
  0x83   :  { %v124_v22 = vpop.f32.mrf.mxu0  ;;  %v129_v23 = vpop.f32.mrf.mxu1 }
  0x84   :  { %v342_v24 = vpop.permute.xlu1 %73  ;;  %v69_v25 = vpop.permute.xlu0 %68  ;;  %v125_v26 = vadd.f32 %v124_v22, %v39_v17  ;;  %v130_v34 = vadd.f32 %v129_v23, %v49_v16 }
  0x85   :  { %v174_v60 = vpop.permute.xlu2 %173 }
  0x86   :  { %vm144_vm1 = vcmp.gt.f32.partialorder %v125_v26, 0.0  ;;  %v184_v27 = vmul.f32 %v154_v21, %v125_v26  ;;  %vm146_vm4 = vcmp.gt.f32.partialorder %v130_v34, 0.0 }
  0x88   :  { %v192_v29 = vsel %vm144_vm1, %v125_v26, %v184_v27 }
  0x89   :  { %v208_v30 = vadd.f32 %v200_v28, %v192_v29 }
  0x8a   :  { %v134_v32 = vpop.f32.mrf.mxu2  ;;  %v139_v41 = vpop.f32.mrf.mxu3 }
  0x8b   :  { %v216_v33 = vmax.f32 %v208_v30, 0.0  ;;  %v126_v35 = vpop.f32.mrf.mxu0  ;;  %v131_v36 = vpop.f32.mrf.mxu1  ;;  %v135_v53 = vadd.f32 %v134_v32, %v59_v15  ;;  %v140_v56 = vadd.f32 %v139_v41, %v69_v25 }
  0x8c   :  { %v127_v37 = vadd.f32 %v126_v35, %v44_v20  ;;  %v132_v38 = vadd.f32 %v131_v36, %v54_v19 }
  0x8d   :  { %224 = vst [vmem:[%s397_s4] sm:$0xff] %v216_v33  ;;  %v162_v39 = vpop.permute.xlu1 %161  ;;  %v158_v40 = vpop.permute.xlu0 %157  ;;  %vm148_vm6 = vcmp.gt.f32.partialorder %v135_v53, 0.0  ;;  %vm150_vm7 = vcmp.gt.f32.partialorder %v140_v56, 0.0 }
  0x8e   :  { %vm145_vm2 = vcmp.gt.f32.partialorder %v127_v37, 0.0  ;;  %vm147_vm3 = vcmp.gt.f32.partialorder %v132_v38, 0.0  ;;  %v187_v42 = vmul.f32 %v166_v31, %v132_v38  ;;  %v186_v45 = vmul.f32 %v162_v39, %v130_v34 }
  0x8f   :  { %v185_v47 = vmul.f32 %v158_v40, %v127_v37 }
  0x90   :  { %v195_v48 = vsel %vm147_vm3, %v132_v38, %v187_v42  ;;  %v194_v49 = vsel %vm146_vm4, %v130_v34, %v186_v45 }
  0x91   :  { %v211_v50 = vadd.f32 %v203_v43, %v195_v48  ;;  %v210_v51 = vadd.f32 %v202_v44, %v194_v49  ;;  %v193_v52 = vsel %vm145_vm2, %v127_v37, %v185_v47 }
  0x92   :  { %v209_v54 = vadd.f32 %v201_v46, %v193_v52  ;;  %v136_v55 = vpop.f32.mrf.mxu2  ;;  %v141_v8 = vpop.f32.mrf.mxu3 }
  0x93   :  { %v219_v57 = vmax.f32 %v211_v50, 0.0  ;;  %v218_v58 = vmax.f32 %v210_v51, 0.0  ;;  %v137_v59 = vadd.f32 %v136_v55, %v64_v18  ;;  %v142_v14 = vadd.f32 %v141_v8, %v342_v24  ;;  %v207_v18 = vld [vmem:[%s396_s3 + $0x38] sm:$0xff] }
  0x94   :  { %v217_v61 = vmax.f32 %v209_v54, 0.0 }
  0x95   :  { %227 = vst [vmem:[%s397_s4 + $0x18] sm:$0xff] %v219_v57  ;;  %vm149_vm5 = vcmp.gt.f32.partialorder %v137_v59, 0.0  ;;  %v189_v62 = vmul.f32 %v174_v60, %v137_v59  ;;  %v170_v0 = vpop.permute.xlu1 %169  ;;  %v178_v1 = vpop.permute.xlu0 %177  ;;  %vm151_vm8 = vcmp.gt.f32.partialorder %v142_v14, 0.0 }
  0x96   :  { %226 = vst [vmem:[%s397_s4 + $0x10] sm:$0xff] %v218_v58  ;;  %v188_v3 = vmul.f32 %v170_v0, %v135_v53  ;;  %v190_v5 = vmul.f32 %v178_v1, %v140_v56 }
  0x97   :  { %225 = vst [vmem:[%s397_s4 + $0x8] sm:$0xff] %v217_v61  ;;  %v197_v6 = vsel %vm149_vm5, %v137_v59, %v189_v62 }
  0x98   :  { %v213_v7 = vadd.f32 %v205_v63, %v197_v6  ;;  %v196_v9 = vsel %vm148_vm6, %v135_v53, %v188_v3  ;;  %v198_v10 = vsel %vm150_vm7, %v140_v56, %v190_v5 }
  0x99   :  { %v212_v11 = vadd.f32 %v204_v2, %v196_v9  ;;  %v214_v12 = vadd.f32 %v206_v4, %v198_v10 }
  0x9a   :  { %v221_v13 = vmax.f32 %v213_v7, 0.0 }
  0x9b   :  { %v220_v15 = vmax.f32 %v212_v11, 0.0  ;;  %v222_v16 = vmax.f32 %v214_v12, 0.0 }
  0x9c   :  { %229 = vst [vmem:[%s397_s4 + $0x28] sm:$0xff] %v221_v13 }
  0x9d   :  { %228 = vst [vmem:[%s397_s4 + $0x20] sm:$0xff] %v220_v15  ;;  %v182_v17 = vpop.permute.xlu1 %181 }
  0x9e   :  { %230 = vst [vmem:[%s397_s4 + $0x30] sm:$0xff] %v222_v16  ;;  %v191_v19 = vmul.f32 %v182_v17, %v142_v14 }
  0xa0   :  { %v199_v20 = vsel %vm151_vm8, %v142_v14, %v191_v19 }
  0xa1   :  { %v215_v21 = vadd.f32 %v207_v18, %v199_v20 }
  0xa3   :  { %v223_v22 = vmax.f32 %v215_v21, 0.0 }
  0xa5   :  { %231 = vst [vmem:[%s397_s4 + $0x38] sm:$0xff] %v223_v22 }

// kernel: _lambda_.91
= control target key start
LH: loop header
LB: loop body
LE: loop exit
PB: predicated region body
PF: predicated region fallthrough
CT: control target
= control target key end

     0   :  { %v135_v1 = vmov 0   ;;  %v136_v2 = vmov 1   ;;  %vm66_vm0 = vcmask 523264   ;;  %s184_s1 = inlined_call_operand.vmem [shape: bf16[64,128], index: 1, kind: input, shape index: {}]   ;;  %s185_s2 = inlined_call_operand.vmem [shape: f32[16,2], index: 2, kind: input, shape index: {}]   ;;  %s186_s0 = inlined_call_operand.vmem [shape: bf16[16,64], index: 0, kind: input, shape index: {}]   ;;  %s187_s3 = inlined_call_operand.vmem [shape: f32[16,128], index: 3, kind: output, shape index: {}]  }
   0x1   :  { %v129_v0 = vld [vmem:[%s184_s1 + $0x18] sm:$0xff]  ;;  %132 = vset.pattern.permute.xlu0 %v135_v1  ;;  %133 = vset.pattern.permute.xlu1 %v136_v2  ;;  %v25_v3 = vld [vmem:[%s185_s2] sm:$0xff]  ;;  %v128_v4 = vld [vmem:[%s184_s1 + $0x10] sm:$0xff] }
   0x2   :  { %74 = vmatpush.bf16.msra.mxu0 %v129_v0  ;;  %29 = vperm.xlu0 %132, %v25_v3   ;;  %v127_v5 = vld [vmem:[%s184_s1 + $0x8] sm:$0xff]  ;;  %v126_v7 = vld [vmem:[%s184_s1] sm:$0xff] }
   0x3   :  { %87 = vperm.xlu1 %133, %v25_v3   ;;  %v26_v6 = vld [vmem:[%s185_s2 + $0x8] sm:$0xff]  ;;  %v125_v8 = vld [vmem:[%s186_s0] sm:$0xff] }
   0x6   :  { %75 = vmatpush.bf16.msra.mxu0 %v128_v4 }
   0xa   :  { %76 = vmatpush.bf16.msra.mxu0 %v127_v5  ;;  %34 = vperm.xlu0 %132, %v26_v6  }
   0xb   :  { %91 = vperm.xlu1 %133, %v26_v6  }
   0xe   :  { %77 = vmatpush.bf16.msra.mxu0 %v126_v7 }
  0x11   :  { %124 = vmatmul.msk.bf16.vlgmr.msra.gmra.mxu0 %vm66_vm0, %v125_v8 }
  0x12   :  { %134 = vset.pattern.permute.xlu0 %v136_v2 }
  0x74   :  { %v30_v9 = vpop.permute.xlu0 %29 }
  0x75   :  { %v88_v10 = vpop.permute.xlu1 %87 }
  0x7c   :  { %v35_v15 = vpop.permute.xlu0 %34 }
  0x7d   :  { %v92_v18 = vpop.permute.xlu1 %91 }
  0x8e   :  { %v79_v11 = vpop.f32.mrf.mxu0 }
  0x8f   :  { %v80_v12 = vadd.f32 %v79_v11, %v30_v9 }
  0x91   :  { %vm84_vm1 = vcmp.gt.f32.partialorder %v80_v12, 0.0  ;;  %v94_v13 = vmul.f32 %v88_v10, %v80_v12 }
  0x93   :  { %v96_v14 = vsel %vm84_vm1, %v80_v12, %v94_v13 }
  0x94   :  { %98 = vst [vmem:[%s187_s3] sm:$0xff] %v96_v14 }
  0x96   :  { %v81_v16 = vpop.f32.mrf.mxu0 }
  0x97   :  { %v82_v17 = vadd.f32 %v81_v16, %v35_v15 }
  0x99   :  { %vm85_vm2 = vcmp.gt.f32.partialorder %v82_v17, 0.0  ;;  %v95_v19 = vmul.f32 %v92_v18, %v82_v17 }
  0x9b   :  { %v97_v20 = vsel %vm85_vm2, %v82_v17, %v95_v19 }
  0x9c   :  { %99 = vst [vmem:[%s187_s3 + $0x8] sm:$0xff] %v97_v20 }

// kernel: _lambda_.98
= control target key start
LH: loop header
LB: loop body
LE: loop exit
PB: predicated region body
PF: predicated region fallthrough
CT: control target
= control target key end

     0   :  { %v131_v1 = vmov 0   ;;  %vm74_vm0 = vcmask 654336   ;;  %s182_s1 = inlined_call_operand.vmem [shape: bf16[80,128], index: 1, kind: input, shape index: {}]   ;;  %s183_s2 = inlined_call_operand.vmem [shape: f32[16,2], index: 2, kind: input, shape index: {}]   ;;  %s184_s0 = inlined_call_operand.vmem [shape: bf16[16,80], index: 0, kind: input, shape index: {}]   ;;  %s185_s3 = inlined_call_operand.vmem [shape: f32[16,128], index: 3, kind: output, shape index: {}]  }
   0x1   :  { %v128_v0 = vld [vmem:[%s182_s1 + $0x20] sm:$0xff]  ;;  %130 = vset.pattern.permute.xlu0 %v131_v1  ;;  %v127_v2 = vld [vmem:[%s182_s1 + $0x18] sm:$0xff]  ;;  %v126_v4 = vld [vmem:[%s182_s1 + $0x10] sm:$0xff] }
   0x2   :  { %81 = vmatpush.bf16.msra.mxu0 %v128_v0  ;;  %v27_v3 = vld [vmem:[%s183_s2] sm:$0xff]  ;;  %v28_v5 = vld [vmem:[%s183_s2 + $0x8] sm:$0xff] }
   0x3   :  { %31 = vperm.xlu0 %130, %v27_v3   ;;  %v125_v6 = vld [vmem:[%s182_s1 + $0x8] sm:$0xff]  ;;  %v124_v7 = vld [vmem:[%s182_s1] sm:$0xff] }
   0x4   :  { %v123_v8 = vld [vmem:[%s184_s0] sm:$0xff] }
   0x6   :  { %82 = vmatpush.bf16.msra.mxu0 %v127_v2 }
   0xa   :  { %83 = vmatpush.bf16.msra.mxu0 %v126_v4 }
   0xb   :  { %36 = vperm.xlu0 %130, %v28_v5  }
   0xe   :  { %84 = vmatpush.bf16.msra.mxu0 %v125_v6 }
  0x12   :  { %85 = vmatpush.bf16.msra.mxu0 %v124_v7 }
  0x15   :  { %122 = vmatmul.msk.bf16.vlgmr.msra.gmra.mxu0 %vm74_vm0, %v123_v8 }
  0x75   :  { %v32_v9 = vpop.permute.xlu0 %31 }
  0x7d   :  { %v37_v12 = vpop.permute.xlu0 %36 }
  0x92   :  { %v87_v10 = vpop.f32.mrf.mxu0 }
  0x93   :  { %v88_v11 = vadd.f32 %v87_v10, %v32_v9 }
  0x95   :  { %92 = vst [vmem:[%s185_s3] sm:$0xff] %v88_v11 }
  0x9a   :  { %v89_v13 = vpop.f32.mrf.mxu0 }
  0x9b   :  { %v90_v14 = vadd.f32 %v89_v13, %v37_v12 }
  0x9d   :  { %93 = vst [vmem:[%s185_s3 + $0x8] sm:$0xff] %v90_v14 }

// kernel: _lambda_.99
= control target key start
LH: loop header
LB: loop body
LE: loop exit
PB: predicated region body
PF: predicated region fallthrough
CT: control target
= control target key end

     0   :  { %v148_v1 = vmov 0   ;;  %v149_v2 = vmov 1   ;;  %vm74_vm0 = vcmask 654336   ;;  %s200_s1 = inlined_call_operand.vmem [shape: bf16[80,128], index: 1, kind: input, shape index: {}]   ;;  %s201_s2 = inlined_call_operand.vmem [shape: f32[16,2], index: 2, kind: input, shape index: {}]   ;;  %s202_s0 = inlined_call_operand.vmem [shape: bf16[16,80], index: 0, kind: input, shape index: {}]   ;;  %s203_s3 = inlined_call_operand.vmem [shape: f32[16,128], index: 3, kind: output, shape index: {}]  }
   0x1   :  { %v142_v0 = vld [vmem:[%s200_s1 + $0x20] sm:$0xff]  ;;  %145 = vset.pattern.permute.xlu0 %v148_v1  ;;  %146 = vset.pattern.permute.xlu1 %v149_v2  ;;  %v141_v3 = vld [vmem:[%s200_s1 + $0x18] sm:$0xff]  ;;  %v140_v5 = vld [vmem:[%s200_s1 + $0x10] sm:$0xff] }
   0x2   :  { %81 = vmatpush.bf16.msra.mxu0 %v142_v0  ;;  %v27_v4 = vld [vmem:[%s201_s2] sm:$0xff]  ;;  %v28_v6 = vld [vmem:[%s201_s2 + $0x8] sm:$0xff] }
   0x3   :  { %31 = vperm.xlu0 %145, %v27_v4   ;;  %95 = vperm.xlu1 %146, %v27_v4   ;;  %v139_v7 = vld [vmem:[%s200_s1 + $0x8] sm:$0xff]  ;;  %v138_v8 = vld [vmem:[%s200_s1] sm:$0xff] }
   0x4   :  { %v137_v9 = vld [vmem:[%s202_s0] sm:$0xff] }
   0x6   :  { %82 = vmatpush.bf16.msra.mxu0 %v141_v3 }
   0xa   :  { %83 = vmatpush.bf16.msra.mxu0 %v140_v5 }
   0xb   :  { %36 = vperm.xlu0 %145, %v28_v6   ;;  %99 = vperm.xlu1 %146, %v28_v6  }
   0xe   :  { %84 = vmatpush.bf16.msra.mxu0 %v139_v7 }
  0x12   :  { %85 = vmatpush.bf16.msra.mxu0 %v138_v8 }
  0x13   :  { %147 = vset.pattern.permute.xlu0 %v149_v2 }
  0x15   :  { %136 = vmatmul.msk.bf16.vlgmr.msra.gmra.mxu0 %vm74_vm0, %v137_v9 }
  0x75   :  { %v32_v10 = vpop.permute.xlu0 %31  ;;  %v96_v11 = vpop.permute.xlu1 %95 }
  0x7d   :  { %v37_v16 = vpop.permute.xlu0 %36  ;;  %v100_v19 = vpop.permute.xlu1 %99 }
  0x92   :  { %v87_v12 = vpop.f32.mrf.mxu0 }
  0x93   :  { %v88_v13 = vadd.f32 %v87_v12, %v32_v10 }
  0x95   :  { %vm92_vm1 = vcmp.gt.f32.partialorder %v88_v13, 0.0  ;;  %v102_v14 = vmul.f32 %v96_v11, %v88_v13 }
  0x97   :  { %v104_v15 = vsel %vm92_vm1, %v88_v13, %v102_v14 }
  0x98   :  { %106 = vst [vmem:[%s203_s3] sm:$0xff] %v104_v15 }
  0x9a   :  { %v89_v17 = vpop.f32.mrf.mxu0 }
  0x9b   :  { %v90_v18 = vadd.f32 %v89_v17, %v37_v16 }
  0x9d   :  { %vm93_vm2 = vcmp.gt.f32.partialorder %v90_v18, 0.0  ;;  %v103_v20 = vmul.f32 %v100_v19, %v90_v18 }
  0x9f   :  { %v105_v21 = vsel %vm93_vm2, %v90_v18, %v103_v20 }
  0xa0   :  { %107 = vst [vmem:[%s203_s3 + $0x8] sm:$0xff] %v105_v21 }

// kernel: _lambda_.143
= control target key start
LH: loop header
LB: loop body
LE: loop exit
PB: predicated region body
PF: predicated region fallthrough
CT: control target
= control target key end

     0   :  { %v99_v1 = vmov 0   ;;  %vm54_vm0 = vcmask 523264   ;;  %s141_s1 = inlined_call_operand.vmem [shape: bf16[64,128], index: 1, kind: input, shape index: {}]   ;;  %s142_s2 = inlined_call_operand.vmem [shape: f32[4,2], index: 2, kind: input, shape index: {}]   ;;  %s143_s0 = inlined_call_operand.vmem [shape: bf16[4,64], index: 0, kind: input, shape index: {}]   ;;  %s144_s3 = inlined_call_operand.vmem [shape: f32[4,128], index: 3, kind: output, shape index: {}]  }
   0x1   :  { %v96_v0 = vld [vmem:[%s141_s1 + $0x18] sm:$0xff]  ;;  %98 = vset.pattern.permute.xlu0 %v99_v1  ;;  %v24_v2 = vld [vmem:[%s142_s2] sm:$0xf]  ;;  %v95_v3 = vld [vmem:[%s141_s1 + $0x10] sm:$0xff] }
   0x2   :  { %62 = vmatpush.bf16.msra.mxu0 %v96_v0  ;;  %27 = vperm.xlu0 %98, %v24_v2   ;;  %v94_v4 = vld [vmem:[%s141_s1 + $0x8] sm:$0xff]  ;;  %v93_v5 = vld [vmem:[%s141_s1] sm:$0xff] }
   0x3   :  { %v15_v6 = vld [vmem:[%s143_s0] sm:$0x3] }
   0x6   :  { %63 = vmatpush.bf16.msra.mxu0 %v95_v3 }
   0xa   :  { %64 = vmatpush.bf16.msra.mxu0 %v94_v4 }
   0xe   :  { %65 = vmatpush.bf16.msra.mxu0 %v93_v5 }
  0x11   :  { %92 = vmatmul.msk.bf16.vlgmr.msra.gmra.mxu0 %vm54_vm0, %v15_v6 }
  0x74   :  { %v28_v7 = vpop.permute.xlu0 %27 }
  0x8e   :  { %v67_v8 = vpop.f32.mrf.mxu0 }
  0x8f   :  { %v68_v9 = vadd.f32 %v67_v8, %v28_v7 }
  0x91   :  { %71 = vst [vmem:[%s144_s3] sm:$0xf] %v68_v9 }
  0x96   :  { %v69_v10 = vpop.f32.mrf.mxu0 }

</bundles_post_ra>
